<compile_context>
chip_gen: v5e
topology: v5e:2x2
jax: 0.10.0
libtpu: 0.0.40
codegen_flags: <defaults>
</compile_context>

<pallas_src>
import jax
import jax.numpy as jnp
from jax.experimental import pallas as pl
from jax.experimental.pallas import tpu as pltpu


# --------------------------------------------------------------------------
# Fully fused kernel: gather + input projection + bi-GRU recurrence + fc head
#   srcf/srcb : (L*B, 1) int32   token ids, natural / time-reversed order
#   emb       : (V, E)           embedding table
#   wif/wib   : (E, 6H)          input projections, gate-major merged columns
#                                 [r_f|r_b|z_f|z_b|n_f|n_b] (zeros in the
#                                 other direction's columns)
#   bgi       : (1, 6H)          b_ih (+ b_hh for r,z) in the same layout
#   whh       : (2H, 6H)         block-diagonal recurrent weight
#   bhn       : (1, 2H)          n-gate hidden bias [fwd | bwd]
#   wfc, bfc  : (2H, D), (1, D)
# Outputs: out (L, B, 2H), hid (B, D)
# --------------------------------------------------------------------------
def _gru_encoder_kernel(srcf_ref, srcb_ref, emb_ref, wif_ref, wib_ref, bgi_ref,
                        whh_ref, bhn_ref, wfc_ref, bfc_ref, out_ref, hid_ref):
    L, B, twoH = out_ref.shape
    H = twoH // 2
    G = 2 * H                       # per-gate slab width (both directions)
    LB = srcf_ref.shape[0]
    V = emb_ref.shape[0]

    # ---- one-time preamble (off the serial recurrence path) ---------------
    # Token gather via one-hot matmul (V small), fused with the input proj.
    emb = emb_ref[...]
    iota_v = jax.lax.broadcasted_iota(jnp.int32, (LB, V), 1)
    ohf = (srcf_ref[...] == iota_v).astype(jnp.float32)            # (LB, V)
    ohb = (srcb_ref[...] == iota_v).astype(jnp.float32)            # (LB, V)
    xf = jnp.dot(ohf, emb, preferred_element_type=jnp.float32)     # (LB, E)
    xb = jnp.dot(ohb, emb, preferred_element_type=jnp.float32)     # (LB, E)
    gi = (jnp.dot(xf, wif_ref[...], preferred_element_type=jnp.float32)
          + jnp.dot(xb, wib_ref[...], preferred_element_type=jnp.float32)
          + bgi_ref[...])                                          # (LB, 6H)

    # Resident weights / pre-broadcast biases (emitted once, not per step).
    whh = whh_ref[...]                                             # (2H, 6H)
    bhn = jnp.broadcast_to(bhn_ref[...], (B, G))                   # (B, 2H)

    # ---- serial bidirectional recurrence: ONE MXU matmul per timestep -----
    h = jnp.zeros((B, G), jnp.float32)                             # [h_fwd|h_bwd]
    for t in range(L):                                             # static unroll
        tb = L - 1 - t
        gi_t = gi[t * B:(t + 1) * B, :]                            # (B, 6H)
        gh = jnp.dot(h, whh, preferred_element_type=jnp.float32)   # (B, 6H)
        rz = jax.nn.sigmoid(gi_t[:, 0:2 * G] + gh[:, 0:2 * G])     # 128-lane slab
        r = rz[:, 0:G]
        z = rz[:, G:2 * G]
        n = jnp.tanh(gi_t[:, 2 * G:3 * G] + r * (gh[:, 2 * G:3 * G] + bhn))
        h = (1.0 - z) * n + z * h
        out_ref[t, :, 0:H] = h[:, 0:H]                             # fwd out at t
        out_ref[tb, :, H:twoH] = h[:, H:twoH]                      # bwd out at L-1-t

    # ---- fc + tanh head: final carry == cat(h_fwd_final, h_bwd_final) -----
    hid_ref[...] = jnp.tanh(
        jnp.dot(h, wfc_ref[...], preferred_element_type=jnp.float32)
        + bfc_ref[...])


# --------------------------------------------------------------------------
# Parameters (stored pre-transposed so x @ W gives gates in PyTorch r|z|n order)
# --------------------------------------------------------------------------
def init_params(key, input_dim, emb_dim, enc_hid_dim, dec_hid_dim):
    ks = jax.random.split(key, 11)
    s = float(1.0 / jnp.sqrt(enc_hid_dim))

    def u(k, shape, scale):
        return jax.random.uniform(k, shape, jnp.float32, -scale, scale)

    return {
        "embedding": u(ks[0], (input_dim, emb_dim), 0.1),
        "w_ih_f": u(ks[1], (emb_dim, 3 * enc_hid_dim), s),
        "w_hh_f": u(ks[2], (enc_hid_dim, 3 * enc_hid_dim), s),
        "b_ih_f": u(ks[3], (1, 3 * enc_hid_dim), s),
        "b_hh_f": u(ks[4], (1, 3 * enc_hid_dim), s),
        "w_ih_b": u(ks[5], (emb_dim, 3 * enc_hid_dim), s),
        "w_hh_b": u(ks[6], (enc_hid_dim, 3 * enc_hid_dim), s),
        "b_ih_b": u(ks[7], (1, 3 * enc_hid_dim), s),
        "b_hh_b": u(ks[8], (1, 3 * enc_hid_dim), s),
        "w_fc": u(ks[9], (2 * enc_hid_dim, dec_hid_dim), s),
        "b_fc": u(ks[10], (1, dec_hid_dim), s),
    }


def gru_encoder_forward(params, src):
    # src: int32 (L, B)
    # TODO(synk): nn.Dropout in train mode needs a torch-equivalent RNG mask;
    # applied as identity here (eval-mode semantics).
    L, B = src.shape
    H = params["w_hh_f"].shape[0]
    E = params["embedding"].shape[1]
    D = params["w_fc"].shape[1]

    def gates(w):  # split (., 3H) into r | z | n
        return w[:, 0:H], w[:, H:2 * H], w[:, 2 * H:3 * H]

    wif_r, wif_z, wif_n = gates(params["w_ih_f"])
    wib_r, wib_z, wib_n = gates(params["w_ih_b"])
    whf_r, whf_z, whf_n = gates(params["w_hh_f"])
    whb_r, whb_z, whb_n = gates(params["w_hh_b"])
    bif_r, bif_z, bif_n = gates(params["b_ih_f"])
    bib_r, bib_z, bib_n = gates(params["b_ih_b"])
    bhf_r, bhf_z, bhf_n = gates(params["b_hh_f"])
    bhb_r, bhb_z, bhb_n = gates(params["b_hh_b"])

    ze = jnp.zeros((E, H), jnp.float32)
    zh = jnp.zeros((H, H), jnp.float32)
    # Gate-major merged column layout: [r_f | r_b | z_f | z_b | n_f | n_b].
    wif = jnp.concatenate([wif_r, ze, wif_z, ze, wif_n, ze], axis=1)   # (E, 6H)
    wib = jnp.concatenate([ze, wib_r, ze, wib_z, ze, wib_n], axis=1)   # (E, 6H)
    # r/z hidden biases folded into the precomputed gi (exact); keep b_hn apart.
    bgi = jnp.concatenate([bif_r + bhf_r, bib_r + bhb_r,
                           bif_z + bhf_z, bib_z + bhb_z,
                           bif_n, bib_n], axis=1)                      # (1, 6H)
    bhn = jnp.concatenate([bhf_n, bhb_n], axis=1)                      # (1, 2H)
    # Block-diagonal recurrent weight: one matmul drives both directions.
    whh = jnp.concatenate(
        [jnp.concatenate([whf_r, zh, whf_z, zh, whf_n, zh], axis=1),
         jnp.concatenate([zh, whb_r, zh, whb_z, zh, whb_n], axis=1)],
        axis=0)                                                        # (2H, 6H)

    srcf = src.reshape(L * B, 1).astype(jnp.int32)
    srcb = src[::-1].reshape(L * B, 1).astype(jnp.int32)

    vmem = lambda: pl.BlockSpec(memory_space=pltpu.MemorySpace.VMEM)
    outputs, hidden = pl.pallas_call(
        _gru_encoder_kernel,
        in_specs=[vmem() for _ in range(10)],
        out_specs=(vmem(), vmem()),
        out_shape=(jax.ShapeDtypeStruct((L, B, 2 * H), jnp.float32),
                   jax.ShapeDtypeStruct((B, D), jnp.float32)),
    )(srcf, srcb, params["embedding"], wif, wib, bgi, whh, bhn,
      params["w_fc"], params["b_fc"])
    return outputs, hidden


# ---------------- pure-JAX reference for correctness check ----------------
def _gru_cell_ref(x, h, w_ih, w_hh, b_ih, b_hh):
    gi = x @ w_ih + b_ih
    gh = h @ w_hh + b_hh
    H = h.shape[-1]
    r = jax.nn.sigmoid(gi[:, :H] + gh[:, :H])
    z = jax.nn.sigmoid(gi[:, H:2 * H] + gh[:, H:2 * H])
    n = jnp.tanh(gi[:, 2 * H:] + r * gh[:, 2 * H:])
    return (1.0 - z) * n + z * h


def reference_forward(params, src):
    embedded = params["embedding"][src]
    L, B, _ = embedded.shape
    H = params["w_hh_f"].shape[0]

    def scan_dir(xs, w_ih, w_hh, b_ih, b_hh):
        def step(h, x):
            h_new = _gru_cell_ref(x, h, w_ih, w_hh, b_ih, b_hh)
            return h_new, h_new
        _, ys = jax.lax.scan(step, jnp.zeros((B, H), jnp.float32), xs)
        return ys

    out_f = scan_dir(embedded, params["w_ih_f"], params["w_hh_f"],
                     params["b_ih_f"], params["b_hh_f"])
    out_b = scan_dir(embedded[::-1], params["w_ih_b"], params["w_hh_b"],
                     params["b_ih_b"], params["b_hh_b"])[::-1]
    outputs = jnp.concatenate([out_f, out_b], axis=-1)
    h_cat = jnp.concatenate([out_f[-1], out_b[0]], axis=-1)
    hidden = jnp.tanh(h_cat @ params["w_fc"] + params["b_fc"])
    return outputs, hidden


if __name__ == "__main__":
    INPUT_DIM = 50      # vocab size
    EMB_DIM = 32
    ENC_HID_DIM = 32
    DEC_HID_DIM = 32
    SEQ_LEN = 8
    BATCH = 2

    key = jax.random.PRNGKey(0)
    k_param, k_src = jax.random.split(key)
    params = init_params(k_param, INPUT_DIM, EMB_DIM, ENC_HID_DIM, DEC_HID_DIM)
    src = jax.random.randint(k_src, (SEQ_LEN, BATCH), 0, INPUT_DIM, dtype=jnp.int32)

    fwd = jax.jit(gru_encoder_forward)
    outputs, hidden = jax.block_until_ready(fwd(params, src))
    ref_outputs, ref_hidden = reference_forward(params, src)

    assert outputs.shape == (SEQ_LEN, BATCH, 2 * ENC_HID_DIM)
    assert hidden.shape == (BATCH, DEC_HID_DIM)
    assert jnp.allclose(outputs, ref_outputs, atol=1e-4, rtol=1e-4)
    assert jnp.allclose(hidden, ref_hidden, atol=1e-4, rtol=1e-4)
    print("KERNEL_OK")
</pallas_src>

<mosaic_0001>
module attributes {stable_mosaic.version = 11 : i64} {
  func.func @_gru_encoder_kernel(%arg0: memref<16x1xi32, #tpu.memory_space<vmem>>, %arg1: memref<16x1xi32, #tpu.memory_space<vmem>>, %arg2: memref<50x32xf32, #tpu.memory_space<vmem>>, %arg3: memref<32x192xf32, #tpu.memory_space<vmem>>, %arg4: memref<32x192xf32, #tpu.memory_space<vmem>>, %arg5: memref<1x192xf32, #tpu.memory_space<vmem>>, %arg6: memref<64x192xf32, #tpu.memory_space<vmem>>, %arg7: memref<1x64xf32, #tpu.memory_space<vmem>>, %arg8: memref<64x32xf32, #tpu.memory_space<vmem>>, %arg9: memref<1x32xf32, #tpu.memory_space<vmem>>, %arg10: memref<8x2x64xf32, #tpu.memory_space<vmem>>, %arg11: memref<2x32xf32, #tpu.memory_space<vmem>>) attributes {dimension_semantics = [], scalar_prefetch = 0 : i64, scratch_operands = 0 : i64, tpu.core_type = #tpu.core_type<tc>} {
    %c0 = arith.constant 0 : index
    %c0_0 = arith.constant 0 : index
    %0 = vector.load %arg2[%c0, %c0_0] : memref<50x32xf32, #tpu.memory_space<vmem>>, vector<50x32xf32>
    %1 = tpu.iota {dimensions = array<i32: 1>} : vector<16x50xi32>
    %c0_1 = arith.constant 0 : index
    %c0_2 = arith.constant 0 : index
    %2 = vector.load %arg0[%c0_1, %c0_2] : memref<16x1xi32, #tpu.memory_space<vmem>>, vector<16x1xi32>
    %3 = vector.broadcast %2 : vector<16x1xi32> to vector<16x50xi32>
    %4 = arith.cmpi eq, %3, %1 : vector<16x50xi32>
    %5 = arith.extui %4 : vector<16x50xi1> to vector<16x50xi32>
    %6 = arith.sitofp %5 : vector<16x50xi32> to vector<16x50xf32>
    %c0_3 = arith.constant 0 : index
    %c0_4 = arith.constant 0 : index
    %7 = vector.load %arg1[%c0_3, %c0_4] : memref<16x1xi32, #tpu.memory_space<vmem>>, vector<16x1xi32>
    %8 = vector.broadcast %7 : vector<16x1xi32> to vector<16x50xi32>
    %9 = arith.cmpi eq, %8, %1 : vector<16x50xi32>
    %10 = arith.extui %9 : vector<16x50xi1> to vector<16x50xi32>
    %11 = arith.sitofp %10 : vector<16x50xi32> to vector<16x50xf32>
    %cst = arith.constant dense<0.000000e+00> : vector<16x32xf32>
    %12 = tpu.matmul %6, %0, %cst {dimension_numbers = #tpu.dot_dimension_numbers<[1], [0], [0], [1], [0, 0, 1, 1], [], []>} : vector<16x50xf32>, vector<50x32xf32>, vector<16x32xf32> -> vector<16x32xf32>
    %cst_5 = arith.constant dense<0.000000e+00> : vector<16x32xf32>
    %13 = tpu.matmul %11, %0, %cst_5 {dimension_numbers = #tpu.dot_dimension_numbers<[1], [0], [0], [1], [0, 0, 1, 1], [], []>} : vector<16x50xf32>, vector<50x32xf32>, vector<16x32xf32> -> vector<16x32xf32>
    %c0_6 = arith.constant 0 : index
    %c0_7 = arith.constant 0 : index
    %14 = vector.load %arg3[%c0_6, %c0_7] : memref<32x192xf32, #tpu.memory_space<vmem>>, vector<32x192xf32>
    %cst_8 = arith.constant dense<0.000000e+00> : vector<16x192xf32>
    %15 = tpu.matmul %12, %14, %cst_8 {dimension_numbers = #tpu.dot_dimension_numbers<[1], [0], [0], [1], [0, 0, 1, 1], [], []>} : vector<16x32xf32>, vector<32x192xf32>, vector<16x192xf32> -> vector<16x192xf32>
    %c0_9 = arith.constant 0 : index
    %c0_10 = arith.constant 0 : index
    %16 = vector.load %arg4[%c0_9, %c0_10] : memref<32x192xf32, #tpu.memory_space<vmem>>, vector<32x192xf32>
    %cst_11 = arith.constant dense<0.000000e+00> : vector<16x192xf32>
    %17 = tpu.matmul %13, %16, %cst_11 {dimension_numbers = #tpu.dot_dimension_numbers<[1], [0], [0], [1], [0, 0, 1, 1], [], []>} : vector<16x32xf32>, vector<32x192xf32>, vector<16x192xf32> -> vector<16x192xf32>
    %18 = arith.addf %15, %17 : vector<16x192xf32>
    %c0_12 = arith.constant 0 : index
    %c0_13 = arith.constant 0 : index
    %19 = vector.load %arg5[%c0_12, %c0_13] : memref<1x192xf32, #tpu.memory_space<vmem>>, vector<1x192xf32>
    %20 = vector.broadcast %19 : vector<1x192xf32> to vector<16x192xf32>
    %21 = arith.addf %18, %20 : vector<16x192xf32>
    %c0_14 = arith.constant 0 : index
    %c0_15 = arith.constant 0 : index
    %22 = vector.load %arg6[%c0_14, %c0_15] : memref<64x192xf32, #tpu.memory_space<vmem>>, vector<64x192xf32>
    %c0_16 = arith.constant 0 : index
    %c0_17 = arith.constant 0 : index
    %23 = vector.load %arg7[%c0_16, %c0_17] : memref<1x64xf32, #tpu.memory_space<vmem>>, vector<1x64xf32>
    %24 = vector.shape_cast %23 : vector<1x64xf32> to vector<1x64xf32>
    %25 = vector.broadcast %24 : vector<1x64xf32> to vector<2x64xf32>
    %cst_18 = arith.constant 0.000000e+00 : f32
    %26 = vector.broadcast %cst_18 : f32 to vector<2x64xf32>
    %27 = vector.extract_strided_slice %21 {offsets = [0, 0], sizes = [2, 192], strides = [1, 1]} : vector<16x192xf32> to vector<2x192xf32>
    %cst_19 = arith.constant dense<0.000000e+00> : vector<2x192xf32>
    %28 = tpu.matmul %26, %22, %cst_19 {dimension_numbers = #tpu.dot_dimension_numbers<[1], [0], [0], [1], [0, 0, 1, 1], [], []>} : vector<2x64xf32>, vector<64x192xf32>, vector<2x192xf32> -> vector<2x192xf32>
    %29 = vector.extract_strided_slice %27 {offsets = [0, 0], sizes = [2, 128], strides = [1, 1]} : vector<2x192xf32> to vector<2x128xf32>
    %30 = vector.extract_strided_slice %28 {offsets = [0, 0], sizes = [2, 128], strides = [1, 1]} : vector<2x192xf32> to vector<2x128xf32>
    %31 = arith.addf %29, %30 : vector<2x128xf32>
    %32 = arith.negf %31 : vector<2x128xf32>
    %33 = math.exp %32 : vector<2x128xf32>
    %cst_20 = arith.constant 1.000000e+00 : f32
    %34 = vector.broadcast %cst_20 : f32 to vector<2x128xf32>
    %35 = arith.addf %34, %33 : vector<2x128xf32>
    %36 = arith.divf %34, %35 : vector<2x128xf32>
    %37 = vector.extract_strided_slice %36 {offsets = [0, 0], sizes = [2, 64], strides = [1, 1]} : vector<2x128xf32> to vector<2x64xf32>
    %38 = vector.extract_strided_slice %36 {offsets = [0, 64], sizes = [2, 64], strides = [1, 1]} : vector<2x128xf32> to vector<2x64xf32>
    %39 = vector.extract_strided_slice %27 {offsets = [0, 128], sizes = [2, 64], strides = [1, 1]} : vector<2x192xf32> to vector<2x64xf32>
    %40 = vector.extract_strided_slice %28 {offsets = [0, 128], sizes = [2, 64], strides = [1, 1]} : vector<2x192xf32> to vector<2x64xf32>
    %41 = arith.addf %40, %25 : vector<2x64xf32>
    %42 = arith.mulf %37, %41 : vector<2x64xf32>
    %43 = arith.addf %39, %42 : vector<2x64xf32>
    %44 = math.tanh %43 : vector<2x64xf32>
    %cst_21 = arith.constant 1.000000e+00 : f32
    %45 = vector.broadcast %cst_21 : f32 to vector<2x64xf32>
    %46 = arith.subf %45, %38 : vector<2x64xf32>
    %47 = arith.mulf %46, %44 : vector<2x64xf32>
    %48 = arith.mulf %38, %26 : vector<2x64xf32>
    %49 = arith.addf %47, %48 : vector<2x64xf32>
    %50 = vector.extract_strided_slice %49 {offsets = [0, 0], sizes = [2, 32], strides = [1, 1]} : vector<2x64xf32> to vector<2x32xf32>
    %c0_22 = arith.constant 0 : index
    %c0_23 = arith.constant 0 : index
    %c0_24 = arith.constant 0 : index
    %51 = vector.load %arg10[%c0_22, %c0_23, %c0_24] : memref<8x2x64xf32, #tpu.memory_space<vmem>>, vector<1x2x32xf32>
    %52 = vector.shape_cast %51 : vector<1x2x32xf32> to vector<2x32xf32>
    %53 = vector.shape_cast %50 : vector<2x32xf32> to vector<1x2x32xf32>
    tpu.vector_store %arg10[%c0_22, %c0_23, %c0_24], %53 {strides = array<i32>} : memref<8x2x64xf32, #tpu.memory_space<vmem>>, vector<1x2x32xf32>,
    %54 = vector.extract_strided_slice %49 {offsets = [0, 32], sizes = [2, 32], strides = [1, 1]} : vector<2x64xf32> to vector<2x32xf32>
    %c7 = arith.constant 7 : index
    %c0_25 = arith.constant 0 : index
    %c32 = arith.constant 32 : index
    %55 = vector.load %arg10[%c7, %c0_25, %c32] : memref<8x2x64xf32, #tpu.memory_space<vmem>>, vector<1x2x32xf32>
    %56 = vector.shape_cast %55 : vector<1x2x32xf32> to vector<2x32xf32>
    %57 = vector.shape_cast %54 : vector<2x32xf32> to vector<1x2x32xf32>
    tpu.vector_store %arg10[%c7, %c0_25, %c32], %57 {strides = array<i32>} : memref<8x2x64xf32, #tpu.memory_space<vmem>>, vector<1x2x32xf32>,
    %58 = vector.extract_strided_slice %21 {offsets = [2, 0], sizes = [2, 192], strides = [1, 1]} : vector<16x192xf32> to vector<2x192xf32>
    %cst_26 = arith.constant dense<0.000000e+00> : vector<2x192xf32>
    %59 = tpu.matmul %49, %22, %cst_26 {dimension_numbers = #tpu.dot_dimension_numbers<[1], [0], [0], [1], [0, 0, 1, 1], [], []>} : vector<2x64xf32>, vector<64x192xf32>, vector<2x192xf32> -> vector<2x192xf32>
    %60 = vector.extract_strided_slice %58 {offsets = [0, 0], sizes = [2, 128], strides = [1, 1]} : vector<2x192xf32> to vector<2x128xf32>
    %61 = vector.extract_strided_slice %59 {offsets = [0, 0], sizes = [2, 128], strides = [1, 1]} : vector<2x192xf32> to vector<2x128xf32>
    %62 = arith.addf %60, %61 : vector<2x128xf32>
    %63 = arith.negf %62 : vector<2x128xf32>
    %64 = math.exp %63 : vector<2x128xf32>
    %cst_27 = arith.constant 1.000000e+00 : f32
    %65 = vector.broadcast %cst_27 : f32 to vector<2x128xf32>
    %66 = arith.addf %65, %64 : vector<2x128xf32>
    %67 = arith.divf %65, %66 : vector<2x128xf32>
    %68 = vector.extract_strided_slice %67 {offsets = [0, 0], sizes = [2, 64], strides = [1, 1]} : vector<2x128xf32> to vector<2x64xf32>
    %69 = vector.extract_strided_slice %67 {offsets = [0, 64], sizes = [2, 64], strides = [1, 1]} : vector<2x128xf32> to vector<2x64xf32>
    %70 = vector.extract_strided_slice %58 {offsets = [0, 128], sizes = [2, 64], strides = [1, 1]} : vector<2x192xf32> to vector<2x64xf32>
    %71 = vector.extract_strided_slice %59 {offsets = [0, 128], sizes = [2, 64], strides = [1, 1]} : vector<2x192xf32> to vector<2x64xf32>
    %72 = arith.addf %71, %25 : vector<2x64xf32>
    %73 = arith.mulf %68, %72 : vector<2x64xf32>
    %74 = arith.addf %70, %73 : vector<2x64xf32>
    %75 = math.tanh %74 : vector<2x64xf32>
    %cst_28 = arith.constant 1.000000e+00 : f32
    %76 = vector.broadcast %cst_28 : f32 to vector<2x64xf32>
    %77 = arith.subf %76, %69 : vector<2x64xf32>
    %78 = arith.mulf %77, %75 : vector<2x64xf32>
    %79 = arith.mulf %69, %49 : vector<2x64xf32>
    %80 = arith.addf %78, %79 : vector<2x64xf32>
    %81 = vector.extract_strided_slice %80 {offsets = [0, 0], sizes = [2, 32], strides = [1, 1]} : vector<2x64xf32> to vector<2x32xf32>
    %c1 = arith.constant 1 : index
    %c0_29 = arith.constant 0 : index
    %c0_30 = arith.constant 0 : index
    %82 = vector.load %arg10[%c1, %c0_29, %c0_30] : memref<8x2x64xf32, #tpu.memory_space<vmem>>, vector<1x2x32xf32>
    %83 = vector.shape_cast %82 : vector<1x2x32xf32> to vector<2x32xf32>
    %84 = vector.shape_cast %81 : vector<2x32xf32> to vector<1x2x32xf32>
    tpu.vector_store %arg10[%c1, %c0_29, %c0_30], %84 {strides = array<i32>} : memref<8x2x64xf32, #tpu.memory_space<vmem>>, vector<1x2x32xf32>,
    %85 = vector.extract_strided_slice %80 {offsets = [0, 32], sizes = [2, 32], strides = [1, 1]} : vector<2x64xf32> to vector<2x32xf32>
    %c6 = arith.constant 6 : index
    %c0_31 = arith.constant 0 : index
    %c32_32 = arith.constant 32 : index
    %86 = vector.load %arg10[%c6, %c0_31, %c32_32] : memref<8x2x64xf32, #tpu.memory_space<vmem>>, vector<1x2x32xf32>
    %87 = vector.shape_cast %86 : vector<1x2x32xf32> to vector<2x32xf32>
    %88 = vector.shape_cast %85 : vector<2x32xf32> to vector<1x2x32xf32>
    tpu.vector_store %arg10[%c6, %c0_31, %c32_32], %88 {strides = array<i32>} : memref<8x2x64xf32, #tpu.memory_space<vmem>>, vector<1x2x32xf32>,
    %89 = vector.extract_strided_slice %21 {offsets = [4, 0], sizes = [2, 192], strides = [1, 1]} : vector<16x192xf32> to vector<2x192xf32>
    %cst_33 = arith.constant dense<0.000000e+00> : vector<2x192xf32>
    %90 = tpu.matmul %80, %22, %cst_33 {dimension_numbers = #tpu.dot_dimension_numbers<[1], [0], [0], [1], [0, 0, 1, 1], [], []>} : vector<2x64xf32>, vector<64x192xf32>, vector<2x192xf32> -> vector<2x192xf32>
    %91 = vector.extract_strided_slice %89 {offsets = [0, 0], sizes = [2, 128], strides = [1, 1]} : vector<2x192xf32> to vector<2x128xf32>
    %92 = vector.extract_strided_slice %90 {offsets = [0, 0], sizes = [2, 128], strides = [1, 1]} : vector<2x192xf32> to vector<2x128xf32>
    %93 = arith.addf %91, %92 : vector<2x128xf32>
    %94 = arith.negf %93 : vector<2x128xf32>
    %95 = math.exp %94 : vector<2x128xf32>
    %cst_34 = arith.constant 1.000000e+00 : f32
    %96 = vector.broadcast %cst_34 : f32 to vector<2x128xf32>
    %97 = arith.addf %96, %95 : vector<2x128xf32>
    %98 = arith.divf %96, %97 : vector<2x128xf32>
    %99 = vector.extract_strided_slice %98 {offsets = [0, 0], sizes = [2, 64], strides = [1, 1]} : vector<2x128xf32> to vector<2x64xf32>
    %100 = vector.extract_strided_slice %98 {offsets = [0, 64], sizes = [2, 64], strides = [1, 1]} : vector<2x128xf32> to vector<2x64xf32>
    %101 = vector.extract_strided_slice %89 {offsets = [0, 128], sizes = [2, 64], strides = [1, 1]} : vector<2x192xf32> to vector<2x64xf32>
    %102 = vector.extract_strided_slice %90 {offsets = [0, 128], sizes = [2, 64], strides = [1, 1]} : vector<2x192xf32> to vector<2x64xf32>
    %103 = arith.addf %102, %25 : vector<2x64xf32>
    %104 = arith.mulf %99, %103 : vector<2x64xf32>
    %105 = arith.addf %101, %104 : vector<2x64xf32>
    %106 = math.tanh %105 : vector<2x64xf32>
    %cst_35 = arith.constant 1.000000e+00 : f32
    %107 = vector.broadcast %cst_35 : f32 to vector<2x64xf32>
    %108 = arith.subf %107, %100 : vector<2x64xf32>
    %109 = arith.mulf %108, %106 : vector<2x64xf32>
    %110 = arith.mulf %100, %80 : vector<2x64xf32>
    %111 = arith.addf %109, %110 : vector<2x64xf32>
    %112 = vector.extract_strided_slice %111 {offsets = [0, 0], sizes = [2, 32], strides = [1, 1]} : vector<2x64xf32> to vector<2x32xf32>
    %c2 = arith.constant 2 : index
    %c0_36 = arith.constant 0 : index
    %c0_37 = arith.constant 0 : index
    %113 = vector.load %arg10[%c2, %c0_36, %c0_37] : memref<8x2x64xf32, #tpu.memory_space<vmem>>, vector<1x2x32xf32>
    %114 = vector.shape_cast %113 : vector<1x2x32xf32> to vector<2x32xf32>
    %115 = vector.shape_cast %112 : vector<2x32xf32> to vector<1x2x32xf32>
    tpu.vector_store %arg10[%c2, %c0_36, %c0_37], %115 {strides = array<i32>} : memref<8x2x64xf32, #tpu.memory_space<vmem>>, vector<1x2x32xf32>,
    %116 = vector.extract_strided_slice %111 {offsets = [0, 32], sizes = [2, 32], strides = [1, 1]} : vector<2x64xf32> to vector<2x32xf32>
    %c5 = arith.constant 5 : index
    %c0_38 = arith.constant 0 : index
    %c32_39 = arith.constant 32 : index
    %117 = vector.load %arg10[%c5, %c0_38, %c32_39] : memref<8x2x64xf32, #tpu.memory_space<vmem>>, vector<1x2x32xf32>
    %118 = vector.shape_cast %117 : vector<1x2x32xf32> to vector<2x32xf32>
    %119 = vector.shape_cast %116 : vector<2x32xf32> to vector<1x2x32xf32>
    tpu.vector_store %arg10[%c5, %c0_38, %c32_39], %119 {strides = array<i32>} : memref<8x2x64xf32, #tpu.memory_space<vmem>>, vector<1x2x32xf32>,
    %120 = vector.extract_strided_slice %21 {offsets = [6, 0], sizes = [2, 192], strides = [1, 1]} : vector<16x192xf32> to vector<2x192xf32>
    %cst_40 = arith.constant dense<0.000000e+00> : vector<2x192xf32>
    %121 = tpu.matmul %111, %22, %cst_40 {dimension_numbers = #tpu.dot_dimension_numbers<[1], [0], [0], [1], [0, 0, 1, 1], [], []>} : vector<2x64xf32>, vector<64x192xf32>, vector<2x192xf32> -> vector<2x192xf32>
    %122 = vector.extract_strided_slice %120 {offsets = [0, 0], sizes = [2, 128], strides = [1, 1]} : vector<2x192xf32> to vector<2x128xf32>
    %123 = vector.extract_strided_slice %121 {offsets = [0, 0], sizes = [2, 128], strides = [1, 1]} : vector<2x192xf32> to vector<2x128xf32>
    %124 = arith.addf %122, %123 : vector<2x128xf32>
    %125 = arith.negf %124 : vector<2x128xf32>
    %126 = math.exp %125 : vector<2x128xf32>
    %cst_41 = arith.constant 1.000000e+00 : f32
    %127 = vector.broadcast %cst_41 : f32 to vector<2x128xf32>
    %128 = arith.addf %127, %126 : vector<2x128xf32>
    %129 = arith.divf %127, %128 : vector<2x128xf32>
    %130 = vector.extract_strided_slice %129 {offsets = [0, 0], sizes = [2, 64], strides = [1, 1]} : vector<2x128xf32> to vector<2x64xf32>
    %131 = vector.extract_strided_slice %129 {offsets = [0, 64], sizes = [2, 64], strides = [1, 1]} : vector<2x128xf32> to vector<2x64xf32>
    %132 = vector.extract_strided_slice %120 {offsets = [0, 128], sizes = [2, 64], strides = [1, 1]} : vector<2x192xf32> to vector<2x64xf32>
    %133 = vector.extract_strided_slice %121 {offsets = [0, 128], sizes = [2, 64], strides = [1, 1]} : vector<2x192xf32> to vector<2x64xf32>
    %134 = arith.addf %133, %25 : vector<2x64xf32>
    %135 = arith.mulf %130, %134 : vector<2x64xf32>
    %136 = arith.addf %132, %135 : vector<2x64xf32>
    %137 = math.tanh %136 : vector<2x64xf32>
    %cst_42 = arith.constant 1.000000e+00 : f32
    %138 = vector.broadcast %cst_42 : f32 to vector<2x64xf32>
    %139 = arith.subf %138, %131 : vector<2x64xf32>
    %140 = arith.mulf %139, %137 : vector<2x64xf32>
    %141 = arith.mulf %131, %111 : vector<2x64xf32>
    %142 = arith.addf %140, %141 : vector<2x64xf32>
    %143 = vector.extract_strided_slice %142 {offsets = [0, 0], sizes = [2, 32], strides = [1, 1]} : vector<2x64xf32> to vector<2x32xf32>
    %c3 = arith.constant 3 : index
    %c0_43 = arith.constant 0 : index
    %c0_44 = arith.constant 0 : index
    %144 = vector.load %arg10[%c3, %c0_43, %c0_44] : memref<8x2x64xf32, #tpu.memory_space<vmem>>, vector<1x2x32xf32>
    %145 = vector.shape_cast %144 : vector<1x2x32xf32> to vector<2x32xf32>
    %146 = vector.shape_cast %143 : vector<2x32xf32> to vector<1x2x32xf32>
    tpu.vector_store %arg10[%c3, %c0_43, %c0_44], %146 {strides = array<i32>} : memref<8x2x64xf32, #tpu.memory_space<vmem>>, vector<1x2x32xf32>,
    %147 = vector.extract_strided_slice %142 {offsets = [0, 32], sizes = [2, 32], strides = [1, 1]} : vector<2x64xf32> to vector<2x32xf32>
    %c4 = arith.constant 4 : index
    %c0_45 = arith.constant 0 : index
    %c32_46 = arith.constant 32 : index
    %148 = vector.load %arg10[%c4, %c0_45, %c32_46] : memref<8x2x64xf32, #tpu.memory_space<vmem>>, vector<1x2x32xf32>
    %149 = vector.shape_cast %148 : vector<1x2x32xf32> to vector<2x32xf32>
    %150 = vector.shape_cast %147 : vector<2x32xf32> to vector<1x2x32xf32>
    tpu.vector_store %arg10[%c4, %c0_45, %c32_46], %150 {strides = array<i32>} : memref<8x2x64xf32, #tpu.memory_space<vmem>>, vector<1x2x32xf32>,
    %151 = vector.extract_strided_slice %21 {offsets = [8, 0], sizes = [2, 192], strides = [1, 1]} : vector<16x192xf32> to vector<2x192xf32>
    %cst_47 = arith.constant dense<0.000000e+00> : vector<2x192xf32>
    %152 = tpu.matmul %142, %22, %cst_47 {dimension_numbers = #tpu.dot_dimension_numbers<[1], [0], [0], [1], [0, 0, 1, 1], [], []>} : vector<2x64xf32>, vector<64x192xf32>, vector<2x192xf32> -> vector<2x192xf32>
    %153 = vector.extract_strided_slice %151 {offsets = [0, 0], sizes = [2, 128], strides = [1, 1]} : vector<2x192xf32> to vector<2x128xf32>
    %154 = vector.extract_strided_slice %152 {offsets = [0, 0], sizes = [2, 128], strides = [1, 1]} : vector<2x192xf32> to vector<2x128xf32>
    %155 = arith.addf %153, %154 : vector<2x128xf32>
    %156 = arith.negf %155 : vector<2x128xf32>
    %157 = math.exp %156 : vector<2x128xf32>
    %cst_48 = arith.constant 1.000000e+00 : f32
    %158 = vector.broadcast %cst_48 : f32 to vector<2x128xf32>
    %159 = arith.addf %158, %157 : vector<2x128xf32>
    %160 = arith.divf %158, %159 : vector<2x128xf32>
    %161 = vector.extract_strided_slice %160 {offsets = [0, 0], sizes = [2, 64], strides = [1, 1]} : vector<2x128xf32> to vector<2x64xf32>
    %162 = vector.extract_strided_slice %160 {offsets = [0, 64], sizes = [2, 64], strides = [1, 1]} : vector<2x128xf32> to vector<2x64xf32>
    %163 = vector.extract_strided_slice %151 {offsets = [0, 128], sizes = [2, 64], strides = [1, 1]} : vector<2x192xf32> to vector<2x64xf32>
    %164 = vector.extract_strided_slice %152 {offsets = [0, 128], sizes = [2, 64], strides = [1, 1]} : vector<2x192xf32> to vector<2x64xf32>
    %165 = arith.addf %164, %25 : vector<2x64xf32>
    %166 = arith.mulf %161, %165 : vector<2x64xf32>
    %167 = arith.addf %163, %166 : vector<2x64xf32>
    %168 = math.tanh %167 : vector<2x64xf32>
    %cst_49 = arith.constant 1.000000e+00 : f32
    %169 = vector.broadcast %cst_49 : f32 to vector<2x64xf32>
    %170 = arith.subf %169, %162 : vector<2x64xf32>
    %171 = arith.mulf %170, %168 : vector<2x64xf32>
    %172 = arith.mulf %162, %142 : vector<2x64xf32>
    %173 = arith.addf %171, %172 : vector<2x64xf32>
    %174 = vector.extract_strided_slice %173 {offsets = [0, 0], sizes = [2, 32], strides = [1, 1]} : vector<2x64xf32> to vector<2x32xf32>
    %c4_50 = arith.constant 4 : index
    %c0_51 = arith.constant 0 : index
    %c0_52 = arith.constant 0 : index
    %175 = vector.load %arg10[%c4_50, %c0_51, %c0_52] : memref<8x2x64xf32, #tpu.memory_space<vmem>>, vector<1x2x32xf32>
    %176 = vector.shape_cast %175 : vector<1x2x32xf32> to vector<2x32xf32>
    %177 = vector.shape_cast %174 : vector<2x32xf32> to vector<1x2x32xf32>
    tpu.vector_store %arg10[%c4_50, %c0_51, %c0_52], %177 {strides = array<i32>} : memref<8x2x64xf32, #tpu.memory_space<vmem>>, vector<1x2x32xf32>,
    %178 = vector.extract_strided_slice %173 {offsets = [0, 32], sizes = [2, 32], strides = [1, 1]} : vector<2x64xf32> to vector<2x32xf32>
    %c3_53 = arith.constant 3 : index
    %c0_54 = arith.constant 0 : index
    %c32_55 = arith.constant 32 : index
    %179 = vector.load %arg10[%c3_53, %c0_54, %c32_55] : memref<8x2x64xf32, #tpu.memory_space<vmem>>, vector<1x2x32xf32>
    %180 = vector.shape_cast %179 : vector<1x2x32xf32> to vector<2x32xf32>
    %181 = vector.shape_cast %178 : vector<2x32xf32> to vector<1x2x32xf32>
    tpu.vector_store %arg10[%c3_53, %c0_54, %c32_55], %181 {strides = array<i32>} : memref<8x2x64xf32, #tpu.memory_space<vmem>>, vector<1x2x32xf32>,
    %182 = vector.extract_strided_slice %21 {offsets = [10, 0], sizes = [2, 192], strides = [1, 1]} : vector<16x192xf32> to vector<2x192xf32>
    %cst_56 = arith.constant dense<0.000000e+00> : vector<2x192xf32>
    %183 = tpu.matmul %173, %22, %cst_56 {dimension_numbers = #tpu.dot_dimension_numbers<[1], [0], [0], [1], [0, 0, 1, 1], [], []>} : vector<2x64xf32>, vector<64x192xf32>, vector<2x192xf32> -> vector<2x192xf32>
    %184 = vector.extract_strided_slice %182 {offsets = [0, 0], sizes = [2, 128], strides = [1, 1]} : vector<2x192xf32> to vector<2x128xf32>
    %185 = vector.extract_strided_slice %183 {offsets = [0, 0], sizes = [2, 128], strides = [1, 1]} : vector<2x192xf32> to vector<2x128xf32>
    %186 = arith.addf %184, %185 : vector<2x128xf32>
    %187 = arith.negf %186 : vector<2x128xf32>
    %188 = math.exp %187 : vector<2x128xf32>
    %cst_57 = arith.constant 1.000000e+00 : f32
    %189 = vector.broadcast %cst_57 : f32 to vector<2x128xf32>
    %190 = arith.addf %189, %188 : vector<2x128xf32>
    %191 = arith.divf %189, %190 : vector<2x128xf32>
    %192 = vector.extract_strided_slice %191 {offsets = [0, 0], sizes = [2, 64], strides = [1, 1]} : vector<2x128xf32> to vector<2x64xf32>
    %193 = vector.extract_strided_slice %191 {offsets = [0, 64], sizes = [2, 64], strides = [1, 1]} : vector<2x128xf32> to vector<2x64xf32>
    %194 = vector.extract_strided_slice %182 {offsets = [0, 128], sizes = [2, 64], strides = [1, 1]} : vector<2x192xf32> to vector<2x64xf32>
    %195 = vector.extract_strided_slice %183 {offsets = [0, 128], sizes = [2, 64], strides = [1, 1]} : vector<2x192xf32> to vector<2x64xf32>
    %196 = arith.addf %195, %25 : vector<2x64xf32>
    %197 = arith.mulf %192, %196 : vector<2x64xf32>
    %198 = arith.addf %194, %197 : vector<2x64xf32>
    %199 = math.tanh %198 : vector<2x64xf32>
    %cst_58 = arith.constant 1.000000e+00 : f32
    %200 = vector.broadcast %cst_58 : f32 to vector<2x64xf32>
    %201 = arith.subf %200, %193 : vector<2x64xf32>
    %202 = arith.mulf %201, %199 : vector<2x64xf32>
    %203 = arith.mulf %193, %173 : vector<2x64xf32>
    %204 = arith.addf %202, %203 : vector<2x64xf32>
    %205 = vector.extract_strided_slice %204 {offsets = [0, 0], sizes = [2, 32], strides = [1, 1]} : vector<2x64xf32> to vector<2x32xf32>
    %c5_59 = arith.constant 5 : index
    %c0_60 = arith.constant 0 : index
    %c0_61 = arith.constant 0 : index
    %206 = vector.load %arg10[%c5_59, %c0_60, %c0_61] : memref<8x2x64xf32, #tpu.memory_space<vmem>>, vector<1x2x32xf32>
    %207 = vector.shape_cast %206 : vector<1x2x32xf32> to vector<2x32xf32>
    %208 = vector.shape_cast %205 : vector<2x32xf32> to vector<1x2x32xf32>
    tpu.vector_store %arg10[%c5_59, %c0_60, %c0_61], %208 {strides = array<i32>} : memref<8x2x64xf32, #tpu.memory_space<vmem>>, vector<1x2x32xf32>,
    %209 = vector.extract_strided_slice %204 {offsets = [0, 32], sizes = [2, 32], strides = [1, 1]} : vector<2x64xf32> to vector<2x32xf32>
    %c2_62 = arith.constant 2 : index
    %c0_63 = arith.constant 0 : index
    %c32_64 = arith.constant 32 : index
    %210 = vector.load %arg10[%c2_62, %c0_63, %c32_64] : memref<8x2x64xf32, #tpu.memory_space<vmem>>, vector<1x2x32xf32>
    %211 = vector.shape_cast %210 : vector<1x2x32xf32> to vector<2x32xf32>
    %212 = vector.shape_cast %209 : vector<2x32xf32> to vector<1x2x32xf32>
    tpu.vector_store %arg10[%c2_62, %c0_63, %c32_64], %212 {strides = array<i32>} : memref<8x2x64xf32, #tpu.memory_space<vmem>>, vector<1x2x32xf32>,
    %213 = vector.extract_strided_slice %21 {offsets = [12, 0], sizes = [2, 192], strides = [1, 1]} : vector<16x192xf32> to vector<2x192xf32>
    %cst_65 = arith.constant dense<0.000000e+00> : vector<2x192xf32>
    %214 = tpu.matmul %204, %22, %cst_65 {dimension_numbers = #tpu.dot_dimension_numbers<[1], [0], [0], [1], [0, 0, 1, 1], [], []>} : vector<2x64xf32>, vector<64x192xf32>, vector<2x192xf32> -> vector<2x192xf32>
    %215 = vector.extract_strided_slice %213 {offsets = [0, 0], sizes = [2, 128], strides = [1, 1]} : vector<2x192xf32> to vector<2x128xf32>
    %216 = vector.extract_strided_slice %214 {offsets = [0, 0], sizes = [2, 128], strides = [1, 1]} : vector<2x192xf32> to vector<2x128xf32>
    %217 = arith.addf %215, %216 : vector<2x128xf32>
    %218 = arith.negf %217 : vector<2x128xf32>
    %219 = math.exp %218 : vector<2x128xf32>
    %cst_66 = arith.constant 1.000000e+00 : f32
    %220 = vector.broadcast %cst_66 : f32 to vector<2x128xf32>
    %221 = arith.addf %220, %219 : vector<2x128xf32>
    %222 = arith.divf %220, %221 : vector<2x128xf32>
    %223 = vector.extract_strided_slice %222 {offsets = [0, 0], sizes = [2, 64], strides = [1, 1]} : vector<2x128xf32> to vector<2x64xf32>
    %224 = vector.extract_strided_slice %222 {offsets = [0, 64], sizes = [2, 64], strides = [1, 1]} : vector<2x128xf32> to vector<2x64xf32>
    %225 = vector.extract_strided_slice %213 {offsets = [0, 128], sizes = [2, 64], strides = [1, 1]} : vector<2x192xf32> to vector<2x64xf32>
    %226 = vector.extract_strided_slice %214 {offsets = [0, 128], sizes = [2, 64], strides = [1, 1]} : vector<2x192xf32> to vector<2x64xf32>
    %227 = arith.addf %226, %25 : vector<2x64xf32>
    %228 = arith.mulf %223, %227 : vector<2x64xf32>
    %229 = arith.addf %225, %228 : vector<2x64xf32>
    %230 = math.tanh %229 : vector<2x64xf32>
    %cst_67 = arith.constant 1.000000e+00 : f32
    %231 = vector.broadcast %cst_67 : f32 to vector<2x64xf32>
    %232 = arith.subf %231, %224 : vector<2x64xf32>
    %233 = arith.mulf %232, %230 : vector<2x64xf32>
    %234 = arith.mulf %224, %204 : vector<2x64xf32>
    %235 = arith.addf %233, %234 : vector<2x64xf32>
    %236 = vector.extract_strided_slice %235 {offsets = [0, 0], sizes = [2, 32], strides = [1, 1]} : vector<2x64xf32> to vector<2x32xf32>
    %c6_68 = arith.constant 6 : index
    %c0_69 = arith.constant 0 : index
    %c0_70 = arith.constant 0 : index
    %237 = vector.load %arg10[%c6_68, %c0_69, %c0_70] : memref<8x2x64xf32, #tpu.memory_space<vmem>>, vector<1x2x32xf32>
    %238 = vector.shape_cast %237 : vector<1x2x32xf32> to vector<2x32xf32>
    %239 = vector.shape_cast %236 : vector<2x32xf32> to vector<1x2x32xf32>
    tpu.vector_store %arg10[%c6_68, %c0_69, %c0_70], %239 {strides = array<i32>} : memref<8x2x64xf32, #tpu.memory_space<vmem>>, vector<1x2x32xf32>,
    %240 = vector.extract_strided_slice %235 {offsets = [0, 32], sizes = [2, 32], strides = [1, 1]} : vector<2x64xf32> to vector<2x32xf32>
    %c1_71 = arith.constant 1 : index
    %c0_72 = arith.constant 0 : index
    %c32_73 = arith.constant 32 : index
    %241 = vector.load %arg10[%c1_71, %c0_72, %c32_73] : memref<8x2x64xf32, #tpu.memory_space<vmem>>, vector<1x2x32xf32>
    %242 = vector.shape_cast %241 : vector<1x2x32xf32> to vector<2x32xf32>
    %243 = vector.shape_cast %240 : vector<2x32xf32> to vector<1x2x32xf32>
    tpu.vector_store %arg10[%c1_71, %c0_72, %c32_73], %243 {strides = array<i32>} : memref<8x2x64xf32, #tpu.memory_space<vmem>>, vector<1x2x32xf32>,
    %244 = vector.extract_strided_slice %21 {offsets = [14, 0], sizes = [2, 192], strides = [1, 1]} : vector<16x192xf32> to vector<2x192xf32>
    %cst_74 = arith.constant dense<0.000000e+00> : vector<2x192xf32>
    %245 = tpu.matmul %235, %22, %cst_74 {dimension_numbers = #tpu.dot_dimension_numbers<[1], [0], [0], [1], [0, 0, 1, 1], [], []>} : vector<2x64xf32>, vector<64x192xf32>, vector<2x192xf32> -> vector<2x192xf32>
    %246 = vector.extract_strided_slice %244 {offsets = [0, 0], sizes = [2, 128], strides = [1, 1]} : vector<2x192xf32> to vector<2x128xf32>
    %247 = vector.extract_strided_slice %245 {offsets = [0, 0], sizes = [2, 128], strides = [1, 1]} : vector<2x192xf32> to vector<2x128xf32>
    %248 = arith.addf %246, %247 : vector<2x128xf32>
    %249 = arith.negf %248 : vector<2x128xf32>
    %250 = math.exp %249 : vector<2x128xf32>
    %cst_75 = arith.constant 1.000000e+00 : f32
    %251 = vector.broadcast %cst_75 : f32 to vector<2x128xf32>
    %252 = arith.addf %251, %250 : vector<2x128xf32>
    %253 = arith.divf %251, %252 : vector<2x128xf32>
    %254 = vector.extract_strided_slice %253 {offsets = [0, 0], sizes = [2, 64], strides = [1, 1]} : vector<2x128xf32> to vector<2x64xf32>
    %255 = vector.extract_strided_slice %253 {offsets = [0, 64], sizes = [2, 64], strides = [1, 1]} : vector<2x128xf32> to vector<2x64xf32>
    %256 = vector.extract_strided_slice %244 {offsets = [0, 128], sizes = [2, 64], strides = [1, 1]} : vector<2x192xf32> to vector<2x64xf32>
    %257 = vector.extract_strided_slice %245 {offsets = [0, 128], sizes = [2, 64], strides = [1, 1]} : vector<2x192xf32> to vector<2x64xf32>
    %258 = arith.addf %257, %25 : vector<2x64xf32>
    %259 = arith.mulf %254, %258 : vector<2x64xf32>
    %260 = arith.addf %256, %259 : vector<2x64xf32>
    %261 = math.tanh %260 : vector<2x64xf32>
    %cst_76 = arith.constant 1.000000e+00 : f32
    %262 = vector.broadcast %cst_76 : f32 to vector<2x64xf32>
    %263 = arith.subf %262, %255 : vector<2x64xf32>
    %264 = arith.mulf %263, %261 : vector<2x64xf32>
    %265 = arith.mulf %255, %235 : vector<2x64xf32>
    %266 = arith.addf %264, %265 : vector<2x64xf32>
    %267 = vector.extract_strided_slice %266 {offsets = [0, 0], sizes = [2, 32], strides = [1, 1]} : vector<2x64xf32> to vector<2x32xf32>
    %c7_77 = arith.constant 7 : index
    %c0_78 = arith.constant 0 : index
    %c0_79 = arith.constant 0 : index
    %268 = vector.load %arg10[%c7_77, %c0_78, %c0_79] : memref<8x2x64xf32, #tpu.memory_space<vmem>>, vector<1x2x32xf32>
    %269 = vector.shape_cast %268 : vector<1x2x32xf32> to vector<2x32xf32>
    %270 = vector.shape_cast %267 : vector<2x32xf32> to vector<1x2x32xf32>
    tpu.vector_store %arg10[%c7_77, %c0_78, %c0_79], %270 {strides = array<i32>} : memref<8x2x64xf32, #tpu.memory_space<vmem>>, vector<1x2x32xf32>,
    %271 = vector.extract_strided_slice %266 {offsets = [0, 32], sizes = [2, 32], strides = [1, 1]} : vector<2x64xf32> to vector<2x32xf32>
    %c0_80 = arith.constant 0 : index
    %c0_81 = arith.constant 0 : index
    %c32_82 = arith.constant 32 : index
    %272 = vector.load %arg10[%c0_80, %c0_81, %c32_82] : memref<8x2x64xf32, #tpu.memory_space<vmem>>, vector<1x2x32xf32>
    %273 = vector.shape_cast %272 : vector<1x2x32xf32> to vector<2x32xf32>
    %274 = vector.shape_cast %271 : vector<2x32xf32> to vector<1x2x32xf32>
    tpu.vector_store %arg10[%c0_80, %c0_81, %c32_82], %274 {strides = array<i32>} : memref<8x2x64xf32, #tpu.memory_space<vmem>>, vector<1x2x32xf32>,
    %c0_83 = arith.constant 0 : index
    %c0_84 = arith.constant 0 : index
    %275 = vector.load %arg8[%c0_83, %c0_84] : memref<64x32xf32, #tpu.memory_space<vmem>>, vector<64x32xf32>
    %cst_85 = arith.constant dense<0.000000e+00> : vector<2x32xf32>
    %276 = tpu.matmul %266, %275, %cst_85 {dimension_numbers = #tpu.dot_dimension_numbers<[1], [0], [0], [1], [0, 0, 1, 1], [], []>} : vector<2x64xf32>, vector<64x32xf32>, vector<2x32xf32> -> vector<2x32xf32>
    %c0_86 = arith.constant 0 : index
    %c0_87 = arith.constant 0 : index
    %277 = vector.load %arg9[%c0_86, %c0_87] : memref<1x32xf32, #tpu.memory_space<vmem>>, vector<1x32xf32>
    %278 = vector.broadcast %277 : vector<1x32xf32> to vector<2x32xf32>
    %279 = arith.addf %276, %278 : vector<2x32xf32>
    %280 = math.tanh %279 : vector<2x32xf32>
    %c0_88 = arith.constant 0 : index
    %c0_89 = arith.constant 0 : index
    %281 = vector.load %arg11[%c0_88, %c0_89] : memref<2x32xf32, #tpu.memory_space<vmem>>, vector<2x32xf32>
    tpu.vector_store %arg11[%c0_88, %c0_89], %280 {strides = array<i32>} : memref<2x32xf32, #tpu.memory_space<vmem>>, vector<2x32xf32>,
    return
  }
}

</mosaic_0001>

<bundles_post_ra>
// kernel: gru_encoder_forward.1
= control target key start
LH: loop header
LB: loop body
LE: loop exit
PB: predicated region body
PF: predicated region fallthrough
CT: control target
= control target key end

     0   :  { %17 = vsyncpa [#allocation3], 0  ;;  %vm83_vm0 = vcmask 1041408   ;;  %v1238_v2 = vmov 0   ;;  %s1751_s0 = inlined_call_operand.vmem [shape: s32[16,1], index: 0, kind: input, shape index: {}]   ;;  %s1752_s1 = inlined_call_operand.vmem [shape: s32[16,1], index: 1, kind: input, shape index: {}]   ;;  %s1753_s2 = inlined_call_operand.vmem [shape: f32[50,32], index: 2, kind: input, shape index: {}]   ;;  %s1754_s3 = inlined_call_operand.vmem [shape: f32[32,192], index: 3, kind: input, shape index: {}]   ;;  %s1755_s4 = inlined_call_operand.vmem [shape: f32[32,192], index: 4, kind: input, shape index: {}]   ;;  %s1756_s5 = inlined_call_operand.vmem [shape: f32[1,192], index: 5, kind: input, shape index: {}]   ;;  %s1757_s6 = inlined_call_operand.vmem [shape: f32[64,192], index: 6, kind: input, shape index: {}]   ;;  %s1758_s7 = inlined_call_operand.vmem [shape: f32[1,64], index: 7, kind: input, shape index: {}]   ;;  %s1759_s8 = inlined_call_operand.vmem [shape: f32[64,32], index: 8, kind: input, shape index: {}]   ;;  %s1760_s9 = inlined_call_operand.vmem [shape: f32[1,32], index: 9, kind: input, shape index: {}]   ;;  %s1761_s10 = inlined_call_operand.hbm [shape: f32[8,2,64], index: 10, kind: output, shape index: {0}]   ;;  %s1762_s11 = inlined_call_operand.hbm [shape: f32[2,32], index: 11, kind: output, shape index: {1}]  }
   0x1   :  { %v62_v0 = vld [vmem:[%s1752_s1] sm:$0xff]  ;;  %1132 = vset.pattern.permute.xlu0 %v1238_v2  ;;  %1133 = vset.pattern.permute.xlu1 %v1238_v2  ;;  %v45_v3 = vld [vmem:[%s1753_s2 + $0x30] sm:$0x3]  ;;  %v44_v4 = vld [vmem:[%s1753_s2 + $0x28] sm:$0xff] }
   0x2   :  { %v48_v1 = vld [vmem:[%s1751_s0] sm:$0xff]  ;;  %65 = vperm.xlu0 %1132, %v62_v0   ;;  %1091 = vmatpush.msk.msra.mxu1 %vm83_vm0, %v45_v3 }
   0x3   :  { %51 = vperm.xlu1 %1133, %v48_v1   ;;  %1088 = vmatpush.msk.msra.mxu0 %vm83_vm0, %v45_v3 }
   0x4   :  { %18 = vsyncpa [#allocation5], 0  ;;  %v43_v5 = vld [vmem:[%s1753_s2 + $0x20] sm:$0xff]  ;;  %126 = vmatpush.msra.mxu1 %v44_v4  ;;  %v42_v6 = vld [vmem:[%s1753_s2 + $0x18] sm:$0xff]  ;;  %v46_v18 = vlaneseq  ;;  %vm76_vm1 = vcmask 408576   ;;  %v1239_v22 = vmov 0.0  }
   0x5   :  { %97 = vmatpush.msra.mxu0 %v44_v4  ;;  %v63_v7 = vld [vmem:[%s1752_s1 + $0x8] sm:$0xff]  ;;  %v41_v9 = vld [vmem:[%s1753_s2 + $0x10] sm:$0xff]  ;;  %v39_v11 = vld [vmem:[%s1753_s2] sm:$0xff]  ;;  %vm155_vm6 = vcmask 261120   ;;  %vm290_vm11 = vcmask 523264   ;;  %vm370_vm12 = vcmask 254976  }
   0x6   :  { %v49_v8 = vld [vmem:[%s1751_s0 + $0x8] sm:$0xff]  ;;  %127 = vmatpush.msra.mxu1 %v43_v5  ;;  %v153_v12 = vld [vmem:[%s1755_s4 + $0x30] sm:$0xff]  ;;  %v154_v13 = vld [vmem:[%s1755_s4 + $0x38] sm:$0xff]  ;;  %v47_v19 = vand.u32 127, %v46_v18  ;;  %vm373_vm13 = vcmask 517376   ;;  %s1056_s12 = sshll.u32 %s1761_s10, 4  ;;  %s1057_s12 = int_to_ptr.hbm [resolvable:$true] %s1056_s12 }
   0x7   :  { %98 = vmatpush.msra.mxu0 %v43_v5  ;;  %v40_v10 = vld [vmem:[%s1753_s2 + $0x8] sm:$0xff]  ;;  %v151_v14 = vld [vmem:[%s1755_s4 + $0x20] sm:$0xff]  ;;  %174 = vmatpush.msra.mxu2 %v153_v12  ;;  %v149_v16 = vld [vmem:[%s1755_s4 + $0x10] sm:$0xff]  ;;  %s1242_s13 = smov 32   ;;  %s1243_s14 = smov 2  }
   0x8   :  { %128 = vmatpush.msra.mxu1 %v42_v6  ;;  %197 = vmatpush.msra.mxu3 %v154_v13  ;;  %v152_v15 = vld [vmem:[%s1755_s4 + $0x28] sm:$0xff]  ;;  %v150_v17 = vld [vmem:[%s1755_s4 + $0x18] sm:$0xff]  ;;  %v147_v29 = vld [vmem:[%s1755_s4] sm:$0xff]  ;;  %s1070_s10 = sshll.u32 %s1762_s11, 4  ;;  %s1071_s10 = int_to_ptr.hbm [resolvable:$true] %s1070_s10 }
   0x9   :  { %99 = vmatpush.msra.mxu0 %v42_v6  ;;  %175 = vmatpush.msra.mxu2 %v151_v14  ;;  %v148_v30 = vld [vmem:[%s1755_s4 + $0x8] sm:$0xff]  ;;  %v145_v31 = vld [vmem:[%s1754_s3 + $0x30] sm:$0xff]  ;;  %v143_v32 = vld [vmem:[%s1754_s3 + $0x20] sm:$0xff] }
   0xa   :  { %68 = vperm.xlu0 %1132, %v63_v7   ;;  %129 = vmatpush.msra.mxu1 %v41_v9  ;;  %v141_v33 = vld [vmem:[%s1754_s3 + $0x10] sm:$0xff]  ;;  %v146_v34 = vld [vmem:[%s1754_s3 + $0x38] sm:$0xff]  ;;  %v144_v36 = vld [vmem:[%s1754_s3 + $0x28] sm:$0xff] }
   0xb   :  { %54 = vperm.xlu1 %1133, %v49_v8   ;;  %100 = vmatpush.msra.mxu0 %v41_v9  ;;  %v1385_v35 = vld [vmem:[%s1757_s6 + $0x70] sm:$0xff]  ;;  %v139_v37 = vld [vmem:[%s1754_s3] sm:$0xff]  ;;  %v142_v39 = vld [vmem:[%s1754_s3 + $0x18] sm:$0xff] }
   0xc   :  { %130 = vmatpush.msra.mxu1 %v40_v10  ;;  %198 = vmatpush.msra.mxu3 %v152_v15  ;;  %v1396_v38 = vld [vmem:[%s1757_s6 + $0x60] sm:$0xff]  ;;  %v1405_v40 = vld [vmem:[%s1757_s6 + $0x50] sm:$0xff]  ;;  %v140_v41 = vld [vmem:[%s1754_s3 + $0x8] sm:$0xff] }
   0xd   :  { %101 = vmatpush.msra.mxu0 %v40_v10  ;;  %176 = vmatpush.msra.mxu2 %v149_v16  ;;  %v1415_v42 = vld [vmem:[%s1757_s6 + $0x40] sm:$0xff]  ;;  %v1420_v43 = vld [vmem:[%s1757_s6 + $0x30] sm:$0xff]  ;;  %v1444_v47 = vld [vmem:[%s1757_s6 + $0x78] sm:$0xff] }
   0xe   :  { %131 = vmatpush.msra.mxu1 %v39_v11  ;;  %199 = vmatpush.msra.mxu3 %v150_v17  ;;  %v1426_v44 = vld [vmem:[%s1757_s6 + $0x20] sm:$0xff]  ;;  %v1432_v45 = vld [vmem:[%s1757_s6 + $0x10] sm:$0xff]  ;;  %v1449_v48 = vld [vmem:[%s1757_s6 + $0x68] sm:$0xff] }
   0xf   :  { %102 = vmatpush.msra.mxu0 %v39_v11  ;;  %177 = vmatpush.msra.mxu2 %v147_v29  ;;  %v1439_v46 = vld [vmem:[%s1757_s6] sm:$0xff]  ;;  %v1457_v49 = vld [vmem:[%s1757_s6 + $0x58] sm:$0xff]  ;;  %v1464_v50 = vld [vmem:[%s1757_s6 + $0x48] sm:$0xff] }
  0x10   :  { %200 = vmatpush.msra.mxu3 %v148_v30  ;;  %322 = vmatpush.msrb.mxu1 %v1444_v47  ;;  %v1471_v51 = vld [vmem:[%s1757_s6 + $0x38] sm:$0xff]  ;;  %v1480_v53 = vld [vmem:[%s1757_s6 + $0x28] sm:$0xff]  ;;  %v260_v63 = vld [vmem:[%s1756_s5] sm:$0x3]  ;;  %s1244_s5 = smov [#allocation4]  }
  0x11   :  { %226 = vmatpush.msrb.mxu2 %v145_v31  ;;  %302 = vmatpush.msrb.mxu0 %v1385_v35  ;;  %v1487_v54 = vld [vmem:[%s1757_s6 + $0x18] sm:$0xff]  ;;  %v1496_v55 = vld [vmem:[%s1757_s6 + $0x8] sm:$0xff]  ;;  %v262_v0 = vperm.slane %v260_v63, 0  ;;  %v263_v10 = vperm.slane %v260_v63, 1  ;;  %s1068_s16 = sshll.u32 %s1244_s5, 4  ;;  %s1069_s16 = int_to_ptr.vmem [resolvable:$true] %s1068_s16 }
  0x12   :  { %249 = vmatpush.msrb.mxu3 %v146_v34  ;;  %323 = vmatpush.msrb.mxu1 %v1449_v48 }
  0x13   :  { %227 = vmatpush.msrb.mxu2 %v143_v32  ;;  %303 = vmatpush.msrb.mxu0 %v1396_v38 }
  0x14   :  { %250 = vmatpush.msrb.mxu3 %v144_v36  ;;  %324 = vmatpush.msrb.mxu1 %v1457_v49 }
  0x15   :  { %228 = vmatpush.msrb.mxu2 %v141_v33  ;;  %304 = vmatpush.msrb.mxu0 %v1405_v40 }
  0x16   :  { %251 = vmatpush.msrb.mxu3 %v142_v39  ;;  %325 = vmatpush.msrb.mxu1 %v1464_v50 }
  0x17   :  { %229 = vmatpush.msrb.mxu2 %v139_v37  ;;  %305 = vmatpush.msrb.mxu0 %v1415_v42 }
  0x18   :  { %252 = vmatpush.msrb.mxu3 %v140_v41  ;;  %326 = vmatpush.msrb.mxu1 %v1471_v51 }
  0x19   :  { %306 = vmatpush.msrb.mxu0 %v1420_v43 }
  0x1a   :  { %327 = vmatpush.msrb.mxu1 %v1480_v53 }
  0x1b   :  { %307 = vmatpush.msrb.mxu0 %v1426_v44 }
  0x1c   :  { %328 = vmatpush.msrb.mxu1 %v1487_v54 }
  0x1d   :  { %308 = vmatpush.msrb.mxu0 %v1432_v45 }
  0x1e   :  { %329 = vmatpush.msrb.mxu1 %v1496_v55 }
  0x1f   :  { %309 = vmatpush.msrb.mxu0 %v1439_v46 }
  0x74   :  { %v66_v20 = vpop.permute.xlu0 %65 }
  0x75   :  { %v52_v21 = vpop.permute.xlu1 %51  ;;  %vm70_vm2 = vcmp.eq.s32.totalorder %v66_v20, %v47_v19 }
  0x76   :  { %vm56_vm3 = vcmp.eq.s32.totalorder %v52_v21, %v47_v19  ;;  %v1086_v23 = vsel %vm70_vm2, 1.0, %v1239_v22 }
  0x77   :  { %v1084_v24 = vsel %vm56_vm3, 1.0, %v1239_v22  ;;  %1092 = vmatmul.msk.f32.vlgmr.msra.gmra.mxu1 %vm76_vm1, %v1086_v23 }
  0x78   :  { %1089 = vmatmul.msk.f32.vlgmr.msra.gmra.mxu0 %vm76_vm1, %v1084_v24  ;;  %500 = vmatpush.msra.mxu1 %v1444_v47 }
  0x79   :  { %480 = vmatpush.msra.mxu0 %v1385_v35 }
  0x7a   :  { %501 = vmatpush.msra.mxu1 %v1449_v48 }
  0x7b   :  { %481 = vmatpush.msra.mxu0 %v1396_v38 }
  0x7c   :  { %v69_v25 = vpop.permute.xlu0 %68  ;;  %502 = vmatpush.msra.mxu1 %v1457_v49 }
  0x7d   :  { %v55_v26 = vpop.permute.xlu1 %54  ;;  %vm71_vm4 = vcmp.eq.s32.totalorder %v69_v25, %v47_v19  ;;  %482 = vmatpush.msra.mxu0 %v1405_v40 }
  0x7e   :  { %vm57_vm5 = vcmp.eq.s32.totalorder %v55_v26, %v47_v19  ;;  %v1087_v27 = vsel %vm71_vm4, 1.0, %v1239_v22  ;;  %503 = vmatpush.msra.mxu1 %v1464_v50  ;;  %v1577_v19 = vld [vmem:[%s1758_s7] ss:$0 sm:$0xff]  ;;  %s1240_s7 = smov 64  }
  0x7f   :  { %v1085_v28 = vsel %vm57_vm5, 1.0, %v1239_v22  ;;  %1093 = vmatmul.msk.f32.gmra.mxu1 %vm76_vm1, %v1087_v27  ;;  %483 = vmatpush.msra.mxu0 %v1415_v42 }
  0x80   :  { %1090 = vmatmul.msk.f32.gmra.mxu0 %vm76_vm1, %v1085_v28  ;;  %504 = vmatpush.msra.mxu1 %v1471_v51 }
  0x81   :  { %484 = vmatpush.msra.mxu0 %v1420_v43 }
  0x82   :  { %505 = vmatpush.msra.mxu1 %v1480_v53 }
  0x83   :  { %485 = vmatpush.msra.mxu0 %v1426_v44 }
  0x84   :  { %506 = vmatpush.msra.mxu1 %v1487_v54 }
  0x85   :  { %486 = vmatpush.msra.mxu0 %v1432_v45 }
  0x86   :  { %507 = vmatpush.msra.mxu1 %v1496_v55 }
  0x87   :  { %330 = vmatmul.f32.vlgmr.msrb.gmra.mxu1 %v1239_v22  ;;  %487 = vmatpush.msra.mxu0 %v1439_v46 }
  0x88   :  { %310 = vmatmul.f32.vlgmr.msrb.gmra.mxu0 %v1239_v22  ;;  %690 = vmatpush.msrb.mxu1 %v1444_v47 }
  0x89   :  { %670 = vmatpush.msrb.mxu0 %v1385_v35 }
  0x8a   :  { %691 = vmatpush.msrb.mxu1 %v1449_v48 }
  0x8b   :  { %671 = vmatpush.msrb.mxu0 %v1396_v38 }
  0x8c   :  { %692 = vmatpush.msrb.mxu1 %v1457_v49 }
  0x8d   :  { %672 = vmatpush.msrb.mxu0 %v1405_v40 }
  0x8e   :  { %693 = vmatpush.msrb.mxu1 %v1464_v50 }
  0x8f   :  { %673 = vmatpush.msrb.mxu0 %v1415_v42 }
  0x90   :  { %694 = vmatpush.msrb.mxu1 %v1471_v51 }
  0x91   :  { %674 = vmatpush.msrb.mxu0 %v1420_v43 }
  0x92   :  { %695 = vmatpush.msrb.mxu1 %v1480_v53 }
  0x93   :  { %675 = vmatpush.msrb.mxu0 %v1426_v44 }
  0x94   :  { %696 = vmatpush.msrb.mxu1 %v1487_v54 }
  0x95   :  { %676 = vmatpush.msrb.mxu0 %v1432_v45 }
  0x96   :  { %697 = vmatpush.msrb.mxu1 %v1496_v55 }
  0x97   :  { %677 = vmatpush.msrb.mxu0 %v1439_v46 }
  0xf4   :  { %v133_v52 = vpop.f32.mrf.mxu1 }
  0xf5   :  { %1094 = vmatmul.msk.f32.vlgmr.msra.gmra.mxu2 %vm155_vm6, %v133_v52  ;;  %1096 = vmatmul.msk.f32.vlgmr.msra.gmra.mxu3 %vm155_vm6, %v133_v52  ;;  %v104_v57 = vpop.f32.mrf.mxu0 }
  0xf6   :  { %385 = vmatpush.msra.mxu2 %v1385_v35  ;;  %405 = vmatpush.msra.mxu3 %v1444_v47 }
  0xf8   :  { %386 = vmatpush.msra.mxu2 %v1396_v38  ;;  %406 = vmatpush.msra.mxu3 %v1449_v48 }
  0xfa   :  { %387 = vmatpush.msra.mxu2 %v1405_v40  ;;  %407 = vmatpush.msra.mxu3 %v1457_v49 }
  0xfc   :  { %v136_v56 = vpop.f32.mrf.mxu1  ;;  %388 = vmatpush.msra.mxu2 %v1415_v42  ;;  %408 = vmatpush.msra.mxu3 %v1464_v50 }
  0xfd   :  { %1095 = vmatmul.msk.f32.gmra.mxu2 %vm155_vm6, %v136_v56  ;;  %1097 = vmatmul.msk.f32.gmra.mxu3 %vm155_vm6, %v136_v56  ;;  %v107_v58 = vpop.f32.mrf.mxu0 }
  0xfe   :  { %389 = vmatpush.msra.mxu2 %v1420_v43  ;;  %409 = vmatpush.msra.mxu3 %v1471_v51 }
 0x100   :  { %390 = vmatpush.msra.mxu2 %v1426_v44  ;;  %410 = vmatpush.msra.mxu3 %v1480_v53 }
 0x102   :  { %391 = vmatpush.msra.mxu2 %v1432_v45  ;;  %411 = vmatpush.msra.mxu3 %v1487_v54 }
 0x104   :  { %392 = vmatpush.msra.mxu2 %v1439_v46  ;;  %412 = vmatpush.msra.mxu3 %v1496_v55  ;;  %v331_v21 = vpop.f32.mrf.mxu1 }
 0x105   :  { %1098 = vmatmul.msk.f32.vlgmr.msrb.gmra.mxu2 %vm155_vm6, %v104_v57  ;;  %1100 = vmatmul.msk.f32.vlgmr.msrb.gmra.mxu3 %vm155_vm6, %v104_v57  ;;  %v311_v4 = vpop.f32.mrf.mxu0  ;;  %v354_v27 = vadd.f32 %v1577_v19, %v331_v21 }
 0x106   :  { %575 = vmatpush.msrb.mxu2 %v1385_v35  ;;  %595 = vmatpush.msrb.mxu3 %v1444_v47 }
 0x108   :  { %576 = vmatpush.msrb.mxu2 %v1396_v38  ;;  %596 = vmatpush.msrb.mxu3 %v1449_v48 }
 0x10a   :  { %577 = vmatpush.msrb.mxu2 %v1405_v40  ;;  %597 = vmatpush.msrb.mxu3 %v1457_v49 }
 0x10c   :  { %578 = vmatpush.msrb.mxu2 %v1415_v42  ;;  %598 = vmatpush.msrb.mxu3 %v1464_v50 }
 0x10d   :  { %1099 = vmatmul.msk.f32.gmra.mxu2 %vm155_vm6, %v107_v58  ;;  %1101 = vmatmul.msk.f32.gmra.mxu3 %vm155_vm6, %v107_v58 }
 0x10e   :  { %579 = vmatpush.msrb.mxu2 %v1420_v43  ;;  %599 = vmatpush.msrb.mxu3 %v1471_v51 }
 0x110   :  { %580 = vmatpush.msrb.mxu2 %v1426_v44  ;;  %600 = vmatpush.msrb.mxu3 %v1480_v53 }
 0x112   :  { %581 = vmatpush.msrb.mxu2 %v1432_v45  ;;  %601 = vmatpush.msrb.mxu3 %v1487_v54 }
 0x114   :  { %582 = vmatpush.msrb.mxu2 %v1439_v46  ;;  %602 = vmatpush.msrb.mxu3 %v1496_v55 }
 0x178   :  { %v179_v59 = vpop.f32.mrf.mxu2  ;;  %v202_v60 = vpop.f32.mrf.mxu3 }
 0x180   :  { %v182_v61 = vpop.f32.mrf.mxu2  ;;  %v205_v62 = vpop.f32.mrf.mxu3 }
 0x188   :  { %v231_v1 = vpop.f32.mrf.mxu2  ;;  %v254_v2 = vpop.f32.mrf.mxu3 }
 0x189   :  { %v232_v3 = vadd.f32 %v231_v1, %v179_v59  ;;  %v255_v25 = vadd.f32 %v254_v2, %v202_v60 }
 0x18b   :  { %v1567_v5 = vadd.f32 %v262_v0, %v232_v3  ;;  %v1580_v31 = vadd.f32 %v263_v10, %v255_v25 }
 0x18d   :  { %v334_v6 = vadd.f32 %v311_v4, %v1567_v5 }
 0x18f   :  { %v1102_v7 = vmul.f32 -1.442695, %v334_v6 }
 0x190   :  { %v234_v8 = vpop.f32.mrf.mxu2  ;;  %v257_v9 = vpop.f32.mrf.mxu3 }
 0x191   :  { %1136 = vpow2.f32 %v1102_v7  ;;  %v235_v11 = vadd.f32 %v234_v8, %v182_v61  ;;  %v258_v12 = vadd.f32 %v257_v9, %v205_v62 }
 0x193   :  { %v1570_v13 = vadd.f32 %v262_v0, %v235_v11  ;;  %v1572_v14 = vadd.f32 %v263_v10, %v258_v12 }
 0x197   :  { %v1137_v15 = vpop.eup %1136 }
 0x198   :  { %v338_v16 = vadd.f32 1.0, %v1137_v15 }
 0x19a   :  { %1138 = vrcp.f32 %v338_v16  ;;  %v350_v22 = vand.u32 2147483648, %v338_v16  ;;  %v348_v24 = vand.u32 2147483647, %v338_v16  ;;  %vm344_vm8 = vweird.f32 %v338_v16 }
 0x19c   :  { %v351_v28 = vor.u32 1.1754944e-38, %v350_v22  ;;  %vm349_vm10 = vcmp.eq.f32.partialorder %v348_v24, 8.507059e+37 }
 0x1a0   :  { %v1139_v17 = vpop.eup %1138 }
 0x1a1   :  { %v340_v18 = vmul.f32 %v1139_v17, %v338_v16  ;;  %vm345_vm7 = vweird.f32 %v1139_v17 }
 0x1a2   :  { %vm346_vm9 = vmor %vm344_vm8, %vm345_vm7 }
 0x1a3   :  { %v341_v20 = vsub.f32 1.0, %v340_v18 }
 0x1a5   :  { %v342_v23 = vmul.f32 %v1139_v17, %v341_v20 }
 0x1a7   :  { %v343_v26 = vadd.f32 %v1139_v17, %v342_v23 }
 0x1a9   :  { %v347_v29 = vsel %vm346_vm9, %v1139_v17, %v343_v26 }
 0x1aa   :  { %v352_v30 = vsel %vm349_vm10, %v351_v28, %v347_v29 }
 0x1ab   :  { %v355_v32 = vmul.f32 %v354_v27, %v352_v30  ;;  %v358_v36 = vsub.f32 1.0, %v352_v30  ;;  %v364_v39 = vmul.f32 0.0, %v352_v30 }
 0x1ad   :  { %v356_v33 = vadd.f32 %v355_v32, %v1580_v31 }
 0x1af   :  { %1140 = vtanh.f32 %v356_v33 }
 0x1b5   :  { %v1141_v34 = vpop.eup %1140 }
 0x1b6   :  { %360 = vrot.lane.b32.xlu2 %v1141_v34, %s1240_s7 }
 0x210   :  { %v361_v37 = vpop.permute.xlu2 %360 }
 0x211   :  { %v363_v41 = vmul.f32 %v361_v37, %v358_v36 }
 0x213   :  { %v365_v52 = vadd.f32 %v364_v39, %v363_v41 }
 0x215   :  { %367 = vrot.lane.b32.xlu2 %v365_v52, %s1240_s7  ;;  %v453_v10 = vrot.slane %v365_v52, 6 }
 0x26f   :  { %v368_v56 = vpop.permute.xlu2 %367 }
 0x270   :  { %1103 = vmatmul.msk.f32.vlgmr.msra.gmra.mxu2 %vm290_vm11, %v368_v56  ;;  %1104 = vmatmul.msk.f32.vlgmr.msra.gmra.mxu3 %vm290_vm11, %v368_v56  ;;  %371 = vst.msk [vmem:[#allocation2] sm:$0x3] %vm370_vm12, %v368_v56 }
 0x271   :  { %751 = vmatpush.msra.mxu2 %v1385_v35  ;;  %771 = vmatpush.msra.mxu3 %v1444_v47  ;;  %374 = vst.msk [vmem:[#allocation2 + $0xe] sm:$0x3] %vm373_vm13, %v368_v56 }
 0x273   :  { %752 = vmatpush.msra.mxu2 %v1396_v38  ;;  %772 = vmatpush.msra.mxu3 %v1449_v48 }
 0x275   :  { %753 = vmatpush.msra.mxu2 %v1405_v40  ;;  %773 = vmatpush.msra.mxu3 %v1457_v49 }
 0x277   :  { %754 = vmatpush.msra.mxu2 %v1415_v42  ;;  %774 = vmatpush.msra.mxu3 %v1464_v50 }
 0x279   :  { %755 = vmatpush.msra.mxu2 %v1420_v43  ;;  %775 = vmatpush.msra.mxu3 %v1471_v51 }
 0x27b   :  { %756 = vmatpush.msra.mxu2 %v1426_v44  ;;  %776 = vmatpush.msra.mxu3 %v1480_v53 }
 0x27d   :  { %757 = vmatpush.msra.mxu2 %v1432_v45  ;;  %777 = vmatpush.msra.mxu3 %v1487_v54 }
 0x27f   :  { %758 = vmatpush.msra.mxu2 %v1439_v46  ;;  %778 = vmatpush.msra.mxu3 %v1496_v55 }
 0x2f3   :  { %v394_v57 = vpop.f32.mrf.mxu2  ;;  %v414_v1 = vpop.f32.mrf.mxu3 }
 0x2f4   :  { %v418_v58 = vrot.slane %v394_v57, 6  ;;  %v440_v7 = vadd.f32 %v1577_v19, %v414_v1 }
 0x2f6   :  { %v420_v59 = vadd.f32 %v418_v58, %v1567_v5  ;;  %v442_v12 = vrot.slane %v440_v7, 6 }
 0x2f8   :  { %v1105_v60 = vmul.f32 -1.442695, %v420_v59 }
 0x2fa   :  { %1142 = vpow2.f32 %v1105_v60 }
 0x300   :  { %v1143_v61 = vpop.eup %1142 }
 0x301   :  { %v424_v62 = vadd.f32 1.0, %v1143_v61 }
 0x303   :  { %1144 = vrcp.f32 %v424_v62  ;;  %v436_v3 = vand.u32 2147483648, %v424_v62  ;;  %v434_v6 = vand.u32 2147483647, %v424_v62  ;;  %vm430_vm15 = vweird.f32 %v424_v62 }
 0x305   :  { %v437_v9 = vor.u32 1.1754944e-38, %v436_v3  ;;  %vm435_vm1 = vcmp.eq.f32.partialorder %v434_v6, 8.507059e+37 }
 0x309   :  { %v1145_v63 = vpop.eup %1144 }
 0x30a   :  { %v426_v0 = vmul.f32 %v1145_v63, %v424_v62  ;;  %vm431_vm14 = vweird.f32 %v1145_v63 }
 0x30b   :  { %vm432_vm0 = vmor %vm430_vm15, %vm431_vm14 }
 0x30c   :  { %v427_v2 = vsub.f32 1.0, %v426_v0 }
 0x30e   :  { %v428_v4 = vmul.f32 %v1145_v63, %v427_v2 }
 0x310   :  { %v429_v8 = vadd.f32 %v1145_v63, %v428_v4 }
 0x312   :  { %v433_v11 = vsel %vm432_vm0, %v1145_v63, %v429_v8 }
 0x313   :  { %v438_v15 = vsel %vm435_vm1, %v437_v9, %v433_v11 }
 0x314   :  { %v444_v16 = vmul.f32 %v442_v12, %v438_v15  ;;  %v455_v17 = vmul.f32 %v453_v10, %v438_v15  ;;  %v447_v21 = vsub.f32 1.0, %v438_v15 }
 0x316   :  { %v445_v18 = vadd.f32 %v444_v16, %v1580_v31 }
 0x318   :  { %1146 = vtanh.f32 %v445_v18 }
 0x31e   :  { %v1147_v20 = vpop.eup %1146 }
 0x31f   :  { %449 = vrot.lane.b32.xlu0 %v1147_v20, %s1240_s7 }
 0x391   :  { %v450_v22 = vpop.permute.xlu0 %449 }
 0x392   :  { %v452_v23 = vmul.f32 %v450_v22, %v447_v21 }
 0x394   :  { %v1609_v24 = vadd.f32 %v455_v17, %v452_v23 }
 0x396   :  { %v467_v25 = vrot.slane %v1609_v24, 2  ;;  %v548_v3 = vrot.slane %v1609_v24, 6 }
 0x398   :  { %468 = vrot.lane.b32.xlu1 %v467_v25, %s1240_s7 }
 0x40a   :  { %v469_v26 = vpop.permute.xlu1 %468 }
 0x40b   :  { %1106 = vmatmul.msk.f32.vlgmr.msra.gmra.mxu0 %vm290_vm11, %v469_v26  ;;  %1107 = vmatmul.msk.f32.vlgmr.msra.gmra.mxu1 %vm290_vm11, %v469_v26 }
 0x40c   :  { %842 = vmatpush.msra.mxu0 %v1385_v35  ;;  %862 = vmatpush.msra.mxu1 %v1444_v47 }
 0x40e   :  { %843 = vmatpush.msra.mxu0 %v1396_v38  ;;  %863 = vmatpush.msra.mxu1 %v1449_v48 }
 0x410   :  { %844 = vmatpush.msra.mxu0 %v1405_v40  ;;  %864 = vmatpush.msra.mxu1 %v1457_v49 }
 0x412   :  { %845 = vmatpush.msra.mxu0 %v1415_v42  ;;  %865 = vmatpush.msra.mxu1 %v1464_v50 }
 0x414   :  { %846 = vmatpush.msra.mxu0 %v1420_v43  ;;  %866 = vmatpush.msra.mxu1 %v1471_v51 }
 0x416   :  { %847 = vmatpush.msra.mxu0 %v1426_v44  ;;  %867 = vmatpush.msra.mxu1 %v1480_v53 }
 0x418   :  { %848 = vmatpush.msra.mxu0 %v1432_v45  ;;  %868 = vmatpush.msra.mxu1 %v1487_v54 }
 0x41a   :  { %849 = vmatpush.msra.mxu0 %v1439_v46  ;;  %869 = vmatpush.msra.mxu1 %v1496_v55 }
 0x488   :  { %v489_v27 = vpop.f32.mrf.mxu0  ;;  %v509_v37 = vpop.f32.mrf.mxu1 }
 0x489   :  { %v513_v28 = vrot.slane %v489_v27, 4  ;;  %v535_v57 = vadd.f32 %v1577_v19, %v509_v37 }
 0x48b   :  { %v515_v29 = vadd.f32 %v513_v28, %v1567_v5  ;;  %v537_v61 = vrot.slane %v535_v57, 4 }
 0x48d   :  { %v1108_v30 = vmul.f32 -1.442695, %v515_v29 }
 0x48f   :  { %1148 = vpow2.f32 %v1108_v30 }
 0x495   :  { %v1149_v32 = vpop.eup %1148 }
 0x496   :  { %v519_v33 = vadd.f32 1.0, %v1149_v32 }
 0x498   :  { %1150 = vrcp.f32 %v519_v33  ;;  %v531_v41 = vand.u32 2147483648, %v519_v33  ;;  %v529_v56 = vand.u32 2147483647, %v519_v33  ;;  %vm525_vm3 = vweird.f32 %v519_v33 }
 0x49a   :  { %v532_v59 = vor.u32 1.1754944e-38, %v531_v41  ;;  %vm530_vm5 = vcmp.eq.f32.partialorder %v529_v56, 8.507059e+37 }
 0x49e   :  { %v1151_v34 = vpop.eup %1150 }
 0x49f   :  { %v521_v36 = vmul.f32 %v1151_v34, %v519_v33  ;;  %vm526_vm2 = vweird.f32 %v1151_v34 }
 0x4a0   :  { %vm527_vm4 = vmor %vm525_vm3, %vm526_vm2 }
 0x4a1   :  { %v522_v39 = vsub.f32 1.0, %v521_v36 }
 0x4a3   :  { %v523_v52 = vmul.f32 %v1151_v34, %v522_v39 }
 0x4a5   :  { %v524_v58 = vadd.f32 %v1151_v34, %v523_v52 }
 0x4a7   :  { %v528_v60 = vsel %vm527_vm4, %v1151_v34, %v524_v58 }
 0x4a8   :  { %v533_v62 = vsel %vm530_vm5, %v532_v59, %v528_v60 }
 0x4a9   :  { %v539_v63 = vmul.f32 %v537_v61, %v533_v62  ;;  %v542_v2 = vsub.f32 1.0, %v533_v62  ;;  %v550_v6 = vmul.f32 %v548_v3, %v533_v62 }
 0x4ab   :  { %v540_v0 = vadd.f32 %v539_v63, %v1580_v31 }
 0x4ad   :  { %1152 = vtanh.f32 %v540_v0 }
 0x4b3   :  { %v1153_v1 = vpop.eup %1152 }
 0x4b4   :  { %544 = vrot.lane.b32.xlu2 %v1153_v1, %s1240_s7 }
 0x50e   :  { %v545_v4 = vpop.permute.xlu2 %544 }
 0x50f   :  { %v547_v7 = vmul.f32 %v545_v4, %v542_v2 }
 0x511   :  { %v1636_v8 = vadd.f32 %v550_v6, %v547_v7 }
 0x513   :  { %v562_v9 = vrot.slane %v1636_v8, 4  ;;  %v643_v20 = vrot.slane %v1636_v8, 6 }
 0x515   :  { %563 = vrot.lane.b32.xlu0 %v562_v9, %s1240_s7 }
 0x587   :  { %v564_v10 = vpop.permute.xlu0 %563 }
 0x588   :  { %1109 = vmatmul.msk.f32.vlgmr.msrb.gmra.mxu2 %vm290_vm11, %v564_v10  ;;  %1110 = vmatmul.msk.f32.vlgmr.msrb.gmra.mxu3 %vm290_vm11, %v564_v10 }
 0x589   :  { %933 = vmatpush.msrb.mxu2 %v1385_v35  ;;  %953 = vmatpush.msrb.mxu3 %v1444_v47 }
 0x58b   :  { %934 = vmatpush.msrb.mxu2 %v1396_v38  ;;  %954 = vmatpush.msrb.mxu3 %v1449_v48 }
 0x58d   :  { %935 = vmatpush.msrb.mxu2 %v1405_v40  ;;  %955 = vmatpush.msrb.mxu3 %v1457_v49 }
 0x58f   :  { %936 = vmatpush.msrb.mxu2 %v1415_v42  ;;  %956 = vmatpush.msrb.mxu3 %v1464_v50 }
 0x591   :  { %937 = vmatpush.msrb.mxu2 %v1420_v43  ;;  %957 = vmatpush.msrb.mxu3 %v1471_v51 }
 0x593   :  { %938 = vmatpush.msrb.mxu2 %v1426_v44  ;;  %958 = vmatpush.msrb.mxu3 %v1480_v53 }
 0x595   :  { %939 = vmatpush.msrb.mxu2 %v1432_v45  ;;  %959 = vmatpush.msrb.mxu3 %v1487_v54 }
 0x597   :  { %940 = vmatpush.msrb.mxu2 %v1439_v46  ;;  %960 = vmatpush.msrb.mxu3 %v1496_v55 }
 0x60b   :  { %v584_v35 = vpop.f32.mrf.mxu2  ;;  %v604_v49 = vpop.f32.mrf.mxu3 }
 0x60c   :  { %v608_v38 = vrot.slane %v584_v35, 2  ;;  %v630_v46 = vadd.f32 %v1577_v19, %v604_v49 }
 0x60e   :  { %v610_v40 = vadd.f32 %v608_v38, %v1567_v5  ;;  %v632_v11 = vrot.slane %v630_v46, 2 }
 0x610   :  { %v1111_v42 = vmul.f32 -1.442695, %v610_v40 }
 0x612   :  { %1154 = vpow2.f32 %v1111_v42 }
 0x618   :  { %v1155_v43 = vpop.eup %1154 }
 0x619   :  { %v614_v47 = vadd.f32 1.0, %v1155_v43 }
 0x61b   :  { %1156 = vrcp.f32 %v614_v47  ;;  %v626_v45 = vand.u32 2147483648, %v614_v47  ;;  %v624_v53 = vand.u32 2147483647, %v614_v47  ;;  %vm620_vm7 = vweird.f32 %v614_v47 }
 0x61d   :  { %v627_v55 = vor.u32 1.1754944e-38, %v626_v45  ;;  %vm625_vm9 = vcmp.eq.f32.partialorder %v624_v53, 8.507059e+37 }
 0x621   :  { %v1157_v44 = vpop.eup %1156 }
 0x622   :  { %v616_v48 = vmul.f32 %v1157_v44, %v614_v47  ;;  %vm621_vm6 = vweird.f32 %v1157_v44 }
 0x623   :  { %vm622_vm8 = vmor %vm620_vm7, %vm621_vm6 }
 0x624   :  { %v617_v50 = vsub.f32 1.0, %v616_v48 }
 0x626   :  { %v618_v51 = vmul.f32 %v1157_v44, %v617_v50 }
 0x628   :  { %v619_v54 = vadd.f32 %v1157_v44, %v618_v51 }
 0x62a   :  { %v623_v5 = vsel %vm622_vm8, %v1157_v44, %v619_v54 }
 0x62b   :  { %v628_v12 = vsel %vm625_vm9, %v627_v55, %v623_v5  ;;  %vm462_vm9 = vcmask 257026  }
 0x62c   :  { %v634_v15 = vmul.f32 %v632_v11, %v628_v12  ;;  %v637_v18 = vsub.f32 1.0, %v628_v12  ;;  %v645_v22 = vmul.f32 %v643_v20, %v628_v12 }
 0x62e   :  { %v635_v16 = vadd.f32 %v634_v15, %v1580_v31 }
 0x630   :  { %1158 = vtanh.f32 %v635_v16 }
 0x636   :  { %v1159_v17 = vpop.eup %1158 }
 0x637   :  { %639 = vrot.lane.b32.xlu1 %v1159_v17, %s1240_s7 }
 0x6a9   :  { %v640_v21 = vpop.permute.xlu1 %639 }
 0x6aa   :  { %v642_v23 = vmul.f32 %v640_v21, %v637_v18 }
 0x6ac   :  { %v1663_v25 = vadd.f32 %v645_v22, %v642_v23 }
 0x6ae   :  { %v657_v26 = vrot.slane %v1663_v25, 6 }
 0x6b0   :  { %658 = vrot.lane.b32.xlu2 %v657_v26, %s1240_s7 }
 0x70a   :  { %v659_v27 = vpop.permute.xlu2 %658 }
 0x70b   :  { %1112 = vmatmul.msk.f32.vlgmr.msrb.gmra.mxu0 %vm290_vm11, %v659_v27  ;;  %1113 = vmatmul.msk.f32.vlgmr.msrb.gmra.mxu1 %vm290_vm11, %v659_v27 }
 0x788   :  { %v679_v31 = vpop.f32.mrf.mxu0  ;;  %v699_v52 = vpop.f32.mrf.mxu1 }
 0x789   :  { %v702_v28 = vadd.f32 %v679_v31, %v1570_v13  ;;  %v722_v59 = vadd.f32 %v1577_v19, %v699_v52 }
 0x78b   :  { %v1114_v29 = vmul.f32 -1.442695, %v702_v28 }
 0x78d   :  { %1160 = vpow2.f32 %v1114_v29 }
 0x793   :  { %v1161_v30 = vpop.eup %1160 }
 0x794   :  { %v706_v32 = vadd.f32 1.0, %v1161_v30 }
 0x796   :  { %1162 = vrcp.f32 %v706_v32  ;;  %v718_v37 = vand.u32 2147483648, %v706_v32  ;;  %v716_v41 = vand.u32 2147483647, %v706_v32  ;;  %vm712_vm14 = vweird.f32 %v706_v32 }
 0x798   :  { %v719_v57 = vor.u32 1.1754944e-38, %v718_v37  ;;  %vm717_vm0 = vcmp.eq.f32.partialorder %v716_v41, 8.507059e+37 }
 0x79c   :  { %v1163_v33 = vpop.eup %1162 }
 0x79d   :  { %v708_v34 = vmul.f32 %v1163_v33, %v706_v32  ;;  %vm713_vm10 = vweird.f32 %v1163_v33 }
 0x79e   :  { %vm714_vm15 = vmor %vm712_vm14, %vm713_vm10  ;;  %vm465_vm10 = vcmask 519426  }
 0x79f   :  { %v709_v36 = vsub.f32 1.0, %v708_v34 }
 0x7a1   :  { %v710_v39 = vmul.f32 %v1163_v33, %v709_v36 }
 0x7a3   :  { %v711_v56 = vadd.f32 %v1163_v33, %v710_v39 }
 0x7a5   :  { %v715_v58 = vsel %vm714_vm15, %v1163_v33, %v711_v56 }
 0x7a6   :  { %v720_v60 = vsel %vm717_vm0, %v719_v57, %v715_v58 }
 0x7a7   :  { %v723_v61 = vmul.f32 %v722_v59, %v720_v60  ;;  %v726_v0 = vsub.f32 1.0, %v720_v60  ;;  %v733_v2 = vmul.f32 %v720_v60, %v657_v26 }
 0x7a9   :  { %v724_v62 = vadd.f32 %v723_v61, %v1572_v14 }
 0x7ab   :  { %1164 = vtanh.f32 %v724_v62 }
 0x7b1   :  { %v1165_v63 = vpop.eup %1164 }
 0x7b2   :  { %728 = vrot.lane.b32.xlu0 %v1165_v63, %s1240_s7 }
 0x824   :  { %v729_v1 = vpop.permute.xlu0 %728 }
 0x825   :  { %v731_v3 = vmul.f32 %v729_v1, %v726_v0 }
 0x827   :  { %v734_v4 = vadd.f32 %v733_v2, %v731_v3 }
 0x829   :  { %736 = vrot.lane.b32.xlu1 %v734_v4, %s1240_s7  ;;  %v819_v46 = vrot.slane %v734_v4, 6 }
 0x89b   :  { %v1674_v6 = vpop.permute.xlu1 %736 }
 0x89c   :  { %1115 = vmatmul.msk.f32.vlgmr.msra.gmra.mxu2 %vm290_vm11, %v1674_v6  ;;  %1116 = vmatmul.msk.f32.vlgmr.msra.gmra.mxu3 %vm290_vm11, %v1674_v6 }
 0x91f   :  { %v760_v7 = vpop.f32.mrf.mxu2  ;;  %v780_v47 = vpop.f32.mrf.mxu3 }
 0x920   :  { %v784_v9 = vrot.slane %v760_v7, 6  ;;  %v806_v45 = vadd.f32 %v1577_v19, %v780_v47 }
 0x922   :  { %v786_v10 = vadd.f32 %v784_v9, %v1570_v13  ;;  %v808_v55 = vrot.slane %v806_v45, 6 }
 0x924   :  { %v1117_v35 = vmul.f32 -1.442695, %v786_v10 }
 0x926   :  { %1166 = vpow2.f32 %v1117_v35 }
 0x92c   :  { %v1167_v38 = vpop.eup %1166 }
 0x92d   :  { %v790_v40 = vadd.f32 1.0, %v1167_v38 }
 0x92f   :  { %1168 = vrcp.f32 %v790_v40  ;;  %v802_v48 = vand.u32 2147483648, %v790_v40  ;;  %v800_v50 = vand.u32 2147483647, %v790_v40  ;;  %vm796_vm2 = vweird.f32 %v790_v40 }
 0x931   :  { %v803_v53 = vor.u32 1.1754944e-38, %v802_v48  ;;  %vm801_vm4 = vcmp.eq.f32.partialorder %v800_v50, 8.507059e+37 }
 0x935   :  { %v1169_v42 = vpop.eup %1168 }
 0x936   :  { %v792_v43 = vmul.f32 %v1169_v42, %v790_v40  ;;  %vm797_vm1 = vweird.f32 %v1169_v42 }
 0x937   :  { %vm798_vm3 = vmor %vm796_vm2, %vm797_vm1  ;;  %vm557_vm2 = vcmask 259076  }
 0x938   :  { %v793_v44 = vsub.f32 1.0, %v792_v43 }
 0x93a   :  { %v794_v49 = vmul.f32 %v1169_v42, %v793_v44 }
 0x93c   :  { %v795_v51 = vadd.f32 %v1169_v42, %v794_v49 }
 0x93e   :  { %v799_v54 = vsel %vm798_vm3, %v1169_v42, %v795_v51  ;;  %vm560_vm3 = vcmask 521476  }
 0x93f   :  { %v804_v5 = vsel %vm801_vm4, %v803_v53, %v799_v54  ;;  %vm652_vm4 = vcmask 261126  }
 0x940   :  { %v810_v11 = vmul.f32 %v808_v55, %v804_v5  ;;  %v821_v12 = vmul.f32 %v819_v46, %v804_v5  ;;  %v813_v17 = vsub.f32 1.0, %v804_v5 }
 0x942   :  { %v811_v15 = vadd.f32 %v810_v11, %v1572_v14 }
 0x944   :  { %1170 = vtanh.f32 %v811_v15 }
 0x94a   :  { %v1171_v16 = vpop.eup %1170 }
 0x94b   :  { %815 = vrot.lane.b32.xlu2 %v1171_v16, %s1240_s7 }
 0x9a5   :  { %v816_v18 = vpop.permute.xlu2 %815 }
 0x9a6   :  { %v818_v20 = vmul.f32 %v816_v18, %v813_v17  ;;  %v1017_v17 = vld [vmem:[%s1759_s8 + $0x30] sm:$0xff]  ;;  %v1014_v18 = vld [vmem:[%s1759_s8 + $0x18] sm:$0xff] }
 0x9a8   :  { %v822_v21 = vadd.f32 %v821_v12, %v818_v20 }
 0x9aa   :  { %v829_v22 = vrot.slane %v822_v21, 2  ;;  %v910_v1 = vrot.slane %v822_v21, 6 }
 0x9ac   :  { %830 = vrot.lane.b32.xlu0 %v829_v22, %s1240_s7  ;;  %v1013_v22 = vld [vmem:[%s1759_s8 + $0x10] sm:$0xff] }
 0xa1e   :  { %v831_v23 = vpop.permute.xlu0 %830 }
 0xa1f   :  { %1118 = vmatmul.msk.f32.vlgmr.msra.gmra.mxu0 %vm290_vm11, %v831_v23  ;;  %1119 = vmatmul.msk.f32.vlgmr.msra.gmra.mxu1 %vm290_vm11, %v831_v23 }
 0xa9c   :  { %v851_v26 = vpop.f32.mrf.mxu0  ;;  %v871_v34 = vpop.f32.mrf.mxu1 }
 0xa9d   :  { %v875_v27 = vrot.slane %v851_v26, 4  ;;  %v897_v52 = vadd.f32 %v1577_v19, %v871_v34 }
 0xa9f   :  { %v877_v31 = vadd.f32 %v875_v27, %v1570_v13  ;;  %v899_v59 = vrot.slane %v897_v52, 4 }
 0xaa1   :  { %v1120_v28 = vmul.f32 -1.442695, %v877_v31  ;;  %v1012_v31 = vld [vmem:[%s1759_s8 + $0x8] sm:$0xff] }
 0xaa3   :  { %1172 = vpow2.f32 %v1120_v28 }
 0xaa9   :  { %v1173_v29 = vpop.eup %1172 }
 0xaaa   :  { %v881_v30 = vadd.f32 1.0, %v1173_v29  ;;  %v1011_v29 = vld [vmem:[%s1759_s8] sm:$0xff] }
 0xaac   :  { %1174 = vrcp.f32 %v881_v30  ;;  %v893_v37 = vand.u32 2147483648, %v881_v30  ;;  %v891_v41 = vand.u32 2147483647, %v881_v30  ;;  %vm887_vm6 = vweird.f32 %v881_v30 }
 0xaae   :  { %v894_v57 = vor.u32 1.1754944e-38, %v893_v37  ;;  %vm892_vm8 = vcmp.eq.f32.partialorder %v891_v41, 8.507059e+37 }
 0xab2   :  { %v1175_v32 = vpop.eup %1174 }
 0xab3   :  { %v883_v33 = vmul.f32 %v1175_v32, %v881_v30  ;;  %vm888_vm5 = vweird.f32 %v1175_v32 }
 0xab4   :  { %vm889_vm7 = vmor %vm887_vm6, %vm888_vm5  ;;  %vm655_vm5 = vcmask 523526  }
 0xab5   :  { %v884_v36 = vsub.f32 1.0, %v883_v33 }
 0xab7   :  { %v885_v39 = vmul.f32 %v1175_v32, %v884_v36 }
 0xab9   :  { %v886_v56 = vadd.f32 %v1175_v32, %v885_v39  ;;  %v1135_v39 = vld [vmem:[%s1760_s9] ss:$0 sm:$0xff] }
 0xabb   :  { %v890_v58 = vsel %vm889_vm7, %v1175_v32, %v886_v56 }
 0xabc   :  { %v895_v60 = vsel %vm892_vm8, %v894_v57, %v890_v58 }
 0xabd   :  { %v901_v61 = vmul.f32 %v899_v59, %v895_v60  ;;  %v904_v0 = vsub.f32 1.0, %v895_v60  ;;  %v912_v3 = vmul.f32 %v910_v1, %v895_v60 }
 0xabf   :  { %v902_v62 = vadd.f32 %v901_v61, %v1572_v14 }
 0xac1   :  { %1176 = vtanh.f32 %v902_v62 }
 0xac7   :  { %v1177_v63 = vpop.eup %1176 }
 0xac8   :  { %906 = vrot.lane.b32.xlu1 %v1177_v63, %s1240_s7 }
 0xb3a   :  { %v907_v2 = vpop.permute.xlu1 %906 }
 0xb3b   :  { %v909_v4 = vmul.f32 %v907_v2, %v904_v0 }
 0xb3d   :  { %v913_v7 = vadd.f32 %v912_v3, %v909_v4 }
 0xb3f   :  { %v920_v9 = vrot.slane %v913_v7, 4 }
 0xb41   :  { %921 = vrot.lane.b32.xlu2 %v920_v9, %s1240_s7 }
 0xb49   :  { %458 = vrot.lane.b32.xlu2 %v1609_v24, %s1240_s7 }
 0xb51   :  { %824 = vrot.lane.b32.xlu2 %v822_v21, %s1240_s7  ;;  %v1001_v21 = vrot.slane %v913_v7, 6 }
 0xb9b   :  { %v922_v10 = vpop.permute.xlu2 %921 }
 0xb9c   :  { %1121 = vmatmul.msk.f32.vlgmr.msrb.gmra.mxu2 %vm290_vm11, %v922_v10  ;;  %1122 = vmatmul.msk.f32.vlgmr.msrb.gmra.mxu3 %vm290_vm11, %v922_v10 }
 0xba3   :  { %v459_v35 = vpop.permute.xlu2 %458 }
 0xba4   :  { %463 = vst.msk [vmem:[#allocation2] sm:$0xc] %vm462_vm9, %v459_v35 }
 0xba5   :  { %466 = vst.msk [vmem:[#allocation2 + $0xa] sm:$0xc] %vm465_vm10, %v459_v35 }
 0xbab   :  { %v825_v33 = vpop.permute.xlu2 %824 }
 0xc1f   :  { %v942_v38 = vpop.f32.mrf.mxu2  ;;  %v962_v49 = vpop.f32.mrf.mxu3 }
 0xc20   :  { %v966_v40 = vrot.slane %v942_v38, 2  ;;  %v988_v46 = vadd.f32 %v1577_v19, %v962_v49  ;;  %v1018_v19 = vld [vmem:[%s1759_s8 + $0x38] sm:$0xff] }
 0xc21   :  { %1036 = vmatpush.msrb.mxu0 %v1018_v19 }
 0xc22   :  { %v968_v42 = vadd.f32 %v966_v40, %v1570_v13  ;;  %v990_v5 = vrot.slane %v988_v46, 2 }
 0xc23   :  { %1037 = vmatpush.msrb.mxu0 %v1017_v17 }
 0xc24   :  { %v1123_v43 = vmul.f32 -1.442695, %v968_v42 }
 0xc26   :  { %1178 = vpow2.f32 %v1123_v43 }
 0xc2c   :  { %v1179_v24 = vpop.eup %1178 }
 0xc2d   :  { %v972_v47 = vadd.f32 1.0, %v1179_v24 }
 0xc2f   :  { %1180 = vrcp.f32 %v972_v47  ;;  %v984_v45 = vand.u32 2147483648, %v972_v47  ;;  %v982_v53 = vand.u32 2147483647, %v972_v47  ;;  %vm978_vm15 = vweird.f32 %v972_v47 }
 0xc31   :  { %v985_v55 = vor.u32 1.1754944e-38, %v984_v45  ;;  %vm983_vm1 = vcmp.eq.f32.partialorder %v982_v53, 8.507059e+37 }
 0xc35   :  { %v1181_v44 = vpop.eup %1180 }
 0xc36   :  { %v974_v48 = vmul.f32 %v1181_v44, %v972_v47  ;;  %vm979_vm14 = vweird.f32 %v1181_v44 }
 0xc37   :  { %vm980_vm0 = vmor %vm978_vm15, %vm979_vm14 }
 0xc38   :  { %v975_v50 = vsub.f32 1.0, %v974_v48 }
 0xc3a   :  { %v976_v51 = vmul.f32 %v1181_v44, %v975_v50 }
 0xc3c   :  { %v977_v54 = vadd.f32 %v1181_v44, %v976_v51 }
 0xc3e   :  { %v981_v13 = vsel %vm980_vm0, %v1181_v44, %v977_v54 }
 0xc3f   :  { %v986_v11 = vsel %vm983_vm1, %v985_v55, %v981_v13 }
 0xc40   :  { %v992_v12 = vmul.f32 %v990_v5, %v986_v11  ;;  %v995_v20 = vsub.f32 1.0, %v986_v11  ;;  %v1003_v26 = vmul.f32 %v1001_v21, %v986_v11 }
 0xc42   :  { %v993_v15 = vadd.f32 %v992_v12, %v1572_v14  ;;  %v1016_v14 = vld [vmem:[%s1759_s8 + $0x28] sm:$0xff] }
 0xc43   :  { %1038 = vmatpush.msrb.mxu0 %v1016_v14 }
 0xc44   :  { %1182 = vtanh.f32 %v993_v15 }
 0xc4a   :  { %v1183_v16 = vpop.eup %1182 }
 0xc4b   :  { %997 = vrot.lane.b32.xlu0 %v1183_v16, %s1240_s7 }
 0xc53   :  { %553 = vrot.lane.b32.xlu0 %v1636_v8, %s1240_s7  ;;  %v1015_v8 = vld [vmem:[%s1759_s8 + $0x20] sm:$0xff]  ;;  %s1241_s8 = smov [#allocation2]  }
 0xc54   :  { %1039 = vmatpush.msrb.mxu0 %v1015_v8  ;;  %s1054_s28 = sshll.u32 %s1241_s8, 4  ;;  %s1055_s28 = int_to_ptr.vmem [resolvable:$true] %s1054_s28 }
 0xc56   :  { %1040 = vmatpush.msrb.mxu0 %v1014_v18 }
 0xc58   :  { %1041 = vmatpush.msrb.mxu0 %v1013_v22 }
 0xc5a   :  { %1042 = vmatpush.msrb.mxu0 %v1012_v31 }
 0xc5b   :  { %915 = vrot.lane.b32.xlu0 %v913_v7, %s1240_s7 }
 0xc5c   :  { %1043 = vmatpush.msrb.mxu0 %v1011_v29 }
 0xcbd   :  { %v998_v23 = vpop.permute.xlu0 %997 }
 0xcbe   :  { %v1000_v27 = vmul.f32 %v998_v23, %v995_v20 }
 0xcc0   :  { %v1004_v28 = vadd.f32 %v1003_v26, %v1000_v27 }
 0xcc2   :  { %v1023_v30 = vrot.slane %v1004_v28, 6 }
 0xcc4   :  { %1024 = vrot.lane.b32.xlu1 %v1023_v30, %s1240_s7 }
 0xcc5   :  { %v554_v32 = vpop.permute.xlu0 %553 }
 0xcc6   :  { %558 = vst.msk [vmem:[#allocation2] sm:$0x30] %vm557_vm2, %v554_v32 }
 0xcc7   :  { %561 = vst.msk [vmem:[#allocation2 + $0x6] sm:$0x30] %vm560_vm3, %v554_v32 }
 0xcc8   :  { %827 = vst.msk [vmem:[#allocation2 + $0x8] sm:$0xc] %vm462_vm9, %v825_v33 }
 0xcc9   :  { %828 = vst.msk [vmem:[#allocation2 + $0x2] sm:$0xc] %vm465_vm10, %v825_v33 }
 0xccc   :  { %648 = vrot.lane.b32.xlu1 %v1663_v25, %s1240_s7 }
 0xccd   :  { %v916_v34 = vpop.permute.xlu0 %915 }
 0xcce   :  { %918 = vst.msk [vmem:[#allocation2 + $0x8] sm:$0x30] %vm557_vm2, %v916_v34 }
 0xccf   :  { %919 = vst.msk [vmem:[#allocation2 - $0x2] sm:$0x30] %vm560_vm3, %v916_v34 }
 0xcd4   :  { %1006 = vrot.lane.b32.xlu1 %v1004_v28, %s1240_s7 }
 0xd36   :  { %v1025_v36 = vpop.permute.xlu1 %1024 }
 0xd37   :  { %1124 = vmatmul.msk.f32.vlgmr.msrb.gmra.mxu0 %vm290_vm11, %v1025_v36 }
 0xd3e   :  { %v649_v37 = vpop.permute.xlu1 %648 }
 0xd3f   :  { %653 = vst.msk [vmem:[#allocation2] sm:$0xc0] %vm652_vm4, %v649_v37 }
 0xd40   :  { %656 = vst.msk [vmem:[#allocation2 + $0x2] sm:$0xc0] %vm655_vm5, %v649_v37 }
 0xd41   :  { %739 = vst.msk [vmem:[#allocation2 + $0x8] sm:$0x3] %vm370_vm12, %v1674_v6 }
 0xd42   :  { %740 = vst.msk [vmem:[#allocation2 + $0x6] sm:$0x3] %vm373_vm13, %v1674_v6 }
 0xd46   :  { %v1007_v25 = vpop.permute.xlu1 %1006 }
 0xd47   :  { %1009 = vst.msk [vmem:[#allocation2 + $0x8] sm:$0xc0] %vm652_vm4, %v1007_v25 }
 0xd48   :  { %1010 = vst.msk [vmem:[#allocation2 - $0x6] sm:$0xc0] %vm655_vm5, %v1007_v25 }
 0xd49   :  { %1062 = dma.vmem_to_hbm [thread:$0]  %s1055_s28, 256, %s1057_s12, [#allocation3], %s1242_s13, %s1242_s13, %s1243_s14  }
 0xdb4   :  { %v1045_v41 = vpop.f32.mrf.mxu0 }
 0xdb5   :  { %v1046_v6 = vadd.f32 %v1135_v39, %v1045_v41 }
 0xdb7   :  { %1184 = vtanh.f32 %v1046_v6 }
 0xdbd   :  { %v1185_v52 = vpop.eup %1184 }
 0xdbe   :  { %1049 = vst.msk [vmem:[#allocation4] sm:$0x3] %vm370_vm12, %v1185_v52 }
 0xdbf   :  { %1073 = dma.vmem_to_hbm [thread:$0]  %s1069_s16, 32, %s1071_s10, [#allocation5]  }
 0xdc0   :  { %1234 = dma.done.wait [#allocation3], 256  }
 0xdc1   :  { %1235 = vsyncadd [#allocation3], 4294967040 }
 0xdc2   :  { %1236 = dma.done.wait [#allocation5], 32  }
 0xdc3   :  { %1237 = vsyncadd [#allocation5], 4294967264 }
 0xdc4   :  { %1082 = vsyncpa [#allocation3], 1 }
 0xdc5   :  { %1083 = vsyncpa [#allocation5], 1 }

</bundles_post_ra>
